<compile_context>
chip_gen: v7x
topology: tpu7x:2x2x1
jax: 0.10.0
libtpu: 0.0.40
codegen_flags: <defaults>
</compile_context>

<pallas_src>
import jax
import jax.numpy as jnp
from jax.experimental import pallas as pl
from jax.experimental.pallas import tpu as pltpu


def _round_up(x, m):
    return (x + m - 1) // m * m


def _choose_tile_b(B, tile_b):
    """MXU-aligned batch tile.

    * multiple of 256 (rows of v6e/v7x's 2x256x256 MXU; also a multiple of
      v5e's 128-row MXU),
    * clamped so tiny batches are not padded past the next 256 boundary,
    * capped so padded batches >= 512 rows always get >= 2 grid steps
      (v7x has two TensorCores to shard the "parallel" batch axis across).
    """
    b_pad = _round_up(B, 256)
    tb = min(_round_up(max(tile_b, 256), 256), b_pad)
    if b_pad // tb < 2 and b_pad >= 512:
        tb = _round_up(b_pad // 2, 256)
    return tb


# ----------------------------- Pallas kernel --------------------------------
def _decoder_mlp_kernel(ew_ref, ep_ref, el_ref,
                        w1w_ref, w1p_ref, w1l_ref, b1_ref,
                        w2_ref, b2_ref, w3_ref, b3_ref,
                        o_ref):
    # Layer 1: relu([ew | ep | el] @ W1 + b1) as three partial bf16 dots with
    # f32 accumulation (avoids a concatenated [B, d_input] activation in HBM).
    h1 = jnp.dot(ew_ref[...], w1w_ref[...], preferred_element_type=jnp.float32)
    h1 = h1 + jnp.dot(ep_ref[...], w1p_ref[...],
                      preferred_element_type=jnp.float32)
    h1 = h1 + jnp.dot(el_ref[...], w1l_ref[...],
                      preferred_element_type=jnp.float32)
    h1 = jnp.maximum(h1 + b1_ref[...], 0.0)          # f32 elementwise

    # Layer 2: relu(h1 @ W2 + b2)
    h2 = jnp.dot(h1.astype(jnp.bfloat16), w2_ref[...],
                 preferred_element_type=jnp.float32)
    h2 = jnp.maximum(h2 + b2_ref[...], 0.0)

    # Output layer (no activation). W3/b3 are zero-padded to 128 columns so
    # this store is a full-lane (128-wide) unmasked vst.
    o_ref[...] = (jnp.dot(h2.astype(jnp.bfloat16), w3_ref[...],
                          preferred_element_type=jnp.float32)
                  + b3_ref[...])


def decoder_mlp(ew, ep, el, w1w, w1p, w1l, b1, w2, b2, w3, b3, *, tile_b):
    """ew/ep/el: [Bp, d_*] bf16 (Bp multiple of tile_b). Weights [in,out] bf16,
    biases [1,out] f32. w3/b3 already lane-padded to a multiple of 128 cols.
    Returns [Bp, d_out_pad] f32."""
    Bp = ew.shape[0]
    assert Bp % tile_b == 0
    d_out_pad = w3.shape[1]
    grid = (Bp // tile_b,)

    batch_spec = lambda a: pl.BlockSpec((tile_b, a.shape[1]), lambda i: (i, 0))
    resident = lambda a: pl.BlockSpec(a.shape, lambda i: (0, 0))

    # Scoped-VMEM estimate: double-buffered streaming tiles + (double-counted,
    # conservative) resident weights. Only bump the limit for very large tiles
    # so small/default configs keep the compiler defaults.
    stream_row_bytes = (sum(a.shape[1] * a.dtype.itemsize for a in (ew, ep, el))
                        + d_out_pad * 4)
    weight_bytes = sum(a.size * a.dtype.itemsize
                       for a in (w1w, w1p, w1l, b1, w2, b2, w3, b3))
    est_vmem = 2 * tile_b * stream_row_bytes + 2 * weight_bytes
    compiler_kwargs = {"dimension_semantics": ("parallel",)}
    if est_vmem > (12 << 20):
        compiler_kwargs["vmem_limit_bytes"] = int(min(est_vmem + (4 << 20),
                                                      64 << 20))

    return pl.pallas_call(
        _decoder_mlp_kernel,
        out_shape=jax.ShapeDtypeStruct((Bp, d_out_pad), jnp.float32),
        grid=grid,
        in_specs=[batch_spec(ew), batch_spec(ep), batch_spec(el),
                  resident(w1w), resident(w1p), resident(w1l), resident(b1),
                  resident(w2), resident(b2), resident(w3), resident(b3)],
        out_specs=pl.BlockSpec((tile_b, d_out_pad), lambda i: (i, 0)),
        compiler_params=pltpu.CompilerParams(**compiler_kwargs),
    )(ew, ep, el, w1w, w1p, w1l, b1, w2, b2, w3, b3)


# ------------------------------ Decoder model -------------------------------
class DecoderParams:
    """Deterministic parameter init mirroring Decoder.init_weights()."""

    def __init__(self, key, *, word_size, pos_size, labels_size,
                 word_embed_size, pos_embed_size, labels_embed_size,
                 d_input, d_hidden1, d_hidden2, d_out):
        ks = jax.random.split(key, 6)
        u = lambda k, shape: jax.random.uniform(
            k, shape, jnp.float32, minval=-0.1, maxval=0.1)
        # Embedding tables: uniform(-0.1, 0.1)
        self.emb_w = u(ks[0], (word_size, word_embed_size))
        self.emb_p = u(ks[1], (pos_size, pos_embed_size))
        self.emb_l = u(ks[2], (labels_size, labels_embed_size))
        # Linear layers: weights uniform(-0.1, 0.1), biases 0.
        # Stored as [in, out] (transposed vs. PyTorch's [out, in]).
        self.w1 = u(ks[3], (d_input, d_hidden1))
        self.b1 = jnp.zeros((1, d_hidden1), jnp.float32)
        self.w2 = u(ks[4], (d_hidden1, d_hidden2))
        self.b2 = jnp.zeros((1, d_hidden2), jnp.float32)
        self.w3 = u(ks[5], (d_hidden2, d_out))
        self.b3 = jnp.zeros((1, d_out), jnp.float32)
        self.d_out = d_out

        # bf16 copies for the MXU. W1 is pre-split by embedding group so
        # layer-1 runs as three partial dots (no concat in the forward path).
        self.d_w = 20 * word_embed_size
        self.d_p = 20 * pos_embed_size
        self.w1_w = self.w1[:self.d_w].astype(jnp.bfloat16)
        self.w1_p = self.w1[self.d_w:self.d_w + self.d_p].astype(jnp.bfloat16)
        self.w1_l = self.w1[self.d_w + self.d_p:].astype(jnp.bfloat16)
        self.w2_bf = self.w2.astype(jnp.bfloat16)
        self.w3_bf = self.w3.astype(jnp.bfloat16)

        # Lane-padded (128-col) output layer so the kernel's store is a full
        # 128-lane unmasked vst; extra columns are exactly zero.
        self.d_out_pad = _round_up(d_out, 128)
        self.w3_pad_bf = (jnp.zeros((d_hidden2, self.d_out_pad), jnp.bfloat16)
                          .at[:, :d_out].set(self.w3_bf))
        self.b3_pad = (jnp.zeros((1, self.d_out_pad), jnp.float32)
                       .at[:, :d_out].set(self.b3))


def decoder_forward(params, inp, *, tile_b=1024):
    """inp: [B, 52] int32. cols 0:20 word ids, 20:40 pos ids, 40:52 label ids.
    Dropout / LeakyReLU exist in __init__ but are never applied in forward."""
    B = inp.shape[0]
    # Embedding gathers (glue, plain JAX); cast to bf16 for the MXU.
    ew = params.emb_w[inp[:, 0:20]].reshape(B, -1).astype(jnp.bfloat16)
    ep = params.emb_p[inp[:, 20:40]].reshape(B, -1).astype(jnp.bfloat16)
    el = params.emb_l[inp[:, 40:52]].reshape(B, -1).astype(jnp.bfloat16)

    # MXU-aligned batch tile; pad the batch up to a multiple of it.
    tb = _choose_tile_b(B, tile_b)
    Bp = _round_up(B, tb)
    if Bp != B:
        pad = ((0, Bp - B), (0, 0))
        ew, ep, el = (jnp.pad(a, pad) for a in (ew, ep, el))

    out = decoder_mlp(ew, ep, el,
                      params.w1_w, params.w1_p, params.w1_l, params.b1,
                      params.w2_bf, params.b2,
                      params.w3_pad_bf, params.b3_pad,
                      tile_b=tb)
    return out[:B, :params.d_out]


# --------------------------- References (checks) -----------------------------
def decoder_forward_ref_f32(params, inp):
    """Pure f32 reference matching the PyTorch module semantics."""
    B = inp.shape[0]
    embed = jnp.concatenate((
        params.emb_w[inp[:, 0:20]].reshape(B, -1),
        params.emb_p[inp[:, 20:40]].reshape(B, -1),
        params.emb_l[inp[:, 40:52]].reshape(B, -1)), axis=1)
    h1 = jnp.maximum(embed @ params.w1 + params.b1, 0.0)
    h2 = jnp.maximum(h1 @ params.w2 + params.b2, 0.0)
    return h2 @ params.w3 + params.b3


def decoder_forward_ref_bf16(params, inp):
    """Reference that mirrors the kernel's bf16/f32 numerics exactly."""
    B = inp.shape[0]
    ew = params.emb_w[inp[:, 0:20]].reshape(B, -1).astype(jnp.bfloat16)
    ep = params.emb_p[inp[:, 20:40]].reshape(B, -1).astype(jnp.bfloat16)
    el = params.emb_l[inp[:, 40:52]].reshape(B, -1).astype(jnp.bfloat16)
    h1 = (jnp.dot(ew, params.w1_w, preferred_element_type=jnp.float32)
          + jnp.dot(ep, params.w1_p, preferred_element_type=jnp.float32)
          + jnp.dot(el, params.w1_l, preferred_element_type=jnp.float32))
    h1 = jnp.maximum(h1 + params.b1, 0.0)
    h2 = jnp.dot(h1.astype(jnp.bfloat16), params.w2_bf,
                 preferred_element_type=jnp.float32)
    h2 = jnp.maximum(h2 + params.b2, 0.0)
    return (jnp.dot(h2.astype(jnp.bfloat16), params.w3_bf,
                    preferred_element_type=jnp.float32) + params.b3)


if __name__ == "__main__":
    # Small configuration consistent with the module's forward (52 id slots).
    word_size, pos_size, labels_size = 50, 20, 12
    word_embed_size, pos_embed_size, labels_embed_size = 16, 8, 8
    d_input = 20 * word_embed_size + 20 * pos_embed_size + 12 * labels_embed_size  # 576
    d_hidden1, d_hidden2, d_out = 128, 64, 32
    B = 300   # pads to 512, tile_b clamps to 256 -> grid=(2,): exercises the
              # streaming pipeline, padding/slicing and the "parallel" axis.

    key = jax.random.PRNGKey(0)
    pkey, ikey = jax.random.split(key)
    params = DecoderParams(
        pkey,
        word_size=word_size, pos_size=pos_size, labels_size=labels_size,
        word_embed_size=word_embed_size, pos_embed_size=pos_embed_size,
        labels_embed_size=labels_embed_size,
        d_input=d_input, d_hidden1=d_hidden1, d_hidden2=d_hidden2, d_out=d_out)

    kw, kp, kl = jax.random.split(ikey, 3)
    inp = jnp.concatenate([
        jax.random.randint(kw, (B, 20), 0, word_size, dtype=jnp.int32),
        jax.random.randint(kp, (B, 20), 0, pos_size, dtype=jnp.int32),
        jax.random.randint(kl, (B, 12), 0, labels_size, dtype=jnp.int32),
    ], axis=1)

    out = jax.block_until_ready(decoder_forward(params, inp))
    ref_bf16 = jax.block_until_ready(decoder_forward_ref_bf16(params, inp))
    ref_f32 = jax.block_until_ready(decoder_forward_ref_f32(params, inp))

    assert out.shape == (B, d_out), out.shape
    # Tight check against the numerics-matched (bf16 operand) reference.
    assert jnp.allclose(out, ref_bf16, atol=1e-4, rtol=1e-4)
    # Sanity check against the full-f32 PyTorch-equivalent reference.
    assert jnp.allclose(out, ref_f32, atol=5e-3, rtol=5e-3)
    print("KERNEL_OK")
</pallas_src>

<mosaic_0001>
module attributes {stable_mosaic.version = 11 : i64} {
  func.func @_decoder_mlp_kernel(%arg0: i32, %arg1: memref<256x320xbf16, #tpu.memory_space<vmem>>, %arg2: memref<256x160xbf16, #tpu.memory_space<vmem>>, %arg3: memref<256x96xbf16, #tpu.memory_space<vmem>>, %arg4: memref<320x128xbf16, #tpu.memory_space<vmem>>, %arg5: memref<160x128xbf16, #tpu.memory_space<vmem>>, %arg6: memref<96x128xbf16, #tpu.memory_space<vmem>>, %arg7: memref<1x128xf32, #tpu.memory_space<vmem>>, %arg8: memref<128x64xbf16, #tpu.memory_space<vmem>>, %arg9: memref<1x64xf32, #tpu.memory_space<vmem>>, %arg10: memref<64x128xbf16, #tpu.memory_space<vmem>>, %arg11: memref<1x128xf32, #tpu.memory_space<vmem>>, %arg12: memref<256x128xf32, #tpu.memory_space<vmem>>) attributes {dimension_semantics = [#tpu.dimension_semantics<parallel>], iteration_bounds = array<i64: 2>, scalar_prefetch = 0 : i64, scratch_operands = 0 : i64, tpu.core_type = #tpu.core_type<tc>, window_params = [{transform_indices = @transform_0, window_bounds = array<i64: 256, 320>}, {transform_indices = @transform_1, window_bounds = array<i64: 256, 160>}, {transform_indices = @transform_2, window_bounds = array<i64: 256, 96>}, {pipeline_mode = #tpu.pipeline_mode<synchronous>, transform_indices = @transform_3, window_bounds = array<i64: 320, 128>}, {pipeline_mode = #tpu.pipeline_mode<synchronous>, transform_indices = @transform_4, window_bounds = array<i64: 160, 128>}, {pipeline_mode = #tpu.pipeline_mode<synchronous>, transform_indices = @transform_5, window_bounds = array<i64: 96, 128>}, {pipeline_mode = #tpu.pipeline_mode<synchronous>, transform_indices = @transform_6, window_bounds = array<i64: 1, 128>}, {pipeline_mode = #tpu.pipeline_mode<synchronous>, transform_indices = @transform_7, window_bounds = array<i64: 128, 64>}, {pipeline_mode = #tpu.pipeline_mode<synchronous>, transform_indices = @transform_8, window_bounds = array<i64: 1, 64>}, {pipeline_mode = #tpu.pipeline_mode<synchronous>, transform_indices = @transform_9, window_bounds = array<i64: 64, 128>}, {pipeline_mode = #tpu.pipeline_mode<synchronous>, transform_indices = @transform_10, window_bounds = array<i64: 1, 128>}, {transform_indices = @transform_11, window_bounds = array<i64: 256, 128>}]} {
    %c0 = arith.constant 0 : index
    %c0_0 = arith.constant 0 : index
    %0 = vector.load %arg1[%c0, %c0_0] : memref<256x320xbf16, #tpu.memory_space<vmem>>, vector<256x320xbf16>
    %c0_1 = arith.constant 0 : index
    %c0_2 = arith.constant 0 : index
    %1 = vector.load %arg4[%c0_1, %c0_2] : memref<320x128xbf16, #tpu.memory_space<vmem>>, vector<320x128xbf16>
    %cst = arith.constant dense<0.000000e+00> : vector<256x128xf32>
    %2 = tpu.matmul %0, %1, %cst {dimension_numbers = #tpu.dot_dimension_numbers<[1], [0], [0], [1], [0, 0, 1, 1], [], []>} : vector<256x320xbf16>, vector<320x128xbf16>, vector<256x128xf32> -> vector<256x128xf32>
    %c0_3 = arith.constant 0 : index
    %c0_4 = arith.constant 0 : index
    %3 = vector.load %arg2[%c0_3, %c0_4] : memref<256x160xbf16, #tpu.memory_space<vmem>>, vector<256x160xbf16>
    %c0_5 = arith.constant 0 : index
    %c0_6 = arith.constant 0 : index
    %4 = vector.load %arg5[%c0_5, %c0_6] : memref<160x128xbf16, #tpu.memory_space<vmem>>, vector<160x128xbf16>
    %cst_7 = arith.constant dense<0.000000e+00> : vector<256x128xf32>
    %5 = tpu.matmul %3, %4, %cst_7 {dimension_numbers = #tpu.dot_dimension_numbers<[1], [0], [0], [1], [0, 0, 1, 1], [], []>} : vector<256x160xbf16>, vector<160x128xbf16>, vector<256x128xf32> -> vector<256x128xf32>
    %6 = arith.addf %2, %5 : vector<256x128xf32>
    %c0_8 = arith.constant 0 : index
    %c0_9 = arith.constant 0 : index
    %7 = vector.load %arg3[%c0_8, %c0_9] : memref<256x96xbf16, #tpu.memory_space<vmem>>, vector<256x96xbf16>
    %c0_10 = arith.constant 0 : index
    %c0_11 = arith.constant 0 : index
    %8 = vector.load %arg6[%c0_10, %c0_11] : memref<96x128xbf16, #tpu.memory_space<vmem>>, vector<96x128xbf16>
    %cst_12 = arith.constant dense<0.000000e+00> : vector<256x128xf32>
    %9 = tpu.matmul %7, %8, %cst_12 {dimension_numbers = #tpu.dot_dimension_numbers<[1], [0], [0], [1], [0, 0, 1, 1], [], []>} : vector<256x96xbf16>, vector<96x128xbf16>, vector<256x128xf32> -> vector<256x128xf32>
    %10 = arith.addf %6, %9 : vector<256x128xf32>
    %c0_13 = arith.constant 0 : index
    %c0_14 = arith.constant 0 : index
    %11 = vector.load %arg7[%c0_13, %c0_14] : memref<1x128xf32, #tpu.memory_space<vmem>>, vector<1x128xf32>
    %12 = vector.broadcast %11 : vector<1x128xf32> to vector<256x128xf32>
    %13 = arith.addf %10, %12 : vector<256x128xf32>
    %cst_15 = arith.constant 0.000000e+00 : f32
    %14 = vector.broadcast %cst_15 : f32 to vector<256x128xf32>
    %15 = arith.maximumf %13, %14 : vector<256x128xf32>
    %16 = arith.truncf %15 : vector<256x128xf32> to vector<256x128xbf16>
    %c0_16 = arith.constant 0 : index
    %c0_17 = arith.constant 0 : index
    %17 = vector.load %arg8[%c0_16, %c0_17] : memref<128x64xbf16, #tpu.memory_space<vmem>>, vector<128x64xbf16>
    %cst_18 = arith.constant dense<0.000000e+00> : vector<256x64xf32>
    %18 = tpu.matmul %16, %17, %cst_18 {dimension_numbers = #tpu.dot_dimension_numbers<[1], [0], [0], [1], [0, 0, 1, 1], [], []>} : vector<256x128xbf16>, vector<128x64xbf16>, vector<256x64xf32> -> vector<256x64xf32>
    %c0_19 = arith.constant 0 : index
    %c0_20 = arith.constant 0 : index
    %19 = vector.load %arg9[%c0_19, %c0_20] : memref<1x64xf32, #tpu.memory_space<vmem>>, vector<1x64xf32>
    %20 = vector.broadcast %19 : vector<1x64xf32> to vector<256x64xf32>
    %21 = arith.addf %18, %20 : vector<256x64xf32>
    %cst_21 = arith.constant 0.000000e+00 : f32
    %22 = vector.broadcast %cst_21 : f32 to vector<256x64xf32>
    %23 = arith.maximumf %21, %22 : vector<256x64xf32>
    %24 = arith.truncf %23 : vector<256x64xf32> to vector<256x64xbf16>
    %c0_22 = arith.constant 0 : index
    %c0_23 = arith.constant 0 : index
    %25 = vector.load %arg10[%c0_22, %c0_23] : memref<64x128xbf16, #tpu.memory_space<vmem>>, vector<64x128xbf16>
    %cst_24 = arith.constant dense<0.000000e+00> : vector<256x128xf32>
    %26 = tpu.matmul %24, %25, %cst_24 {dimension_numbers = #tpu.dot_dimension_numbers<[1], [0], [0], [1], [0, 0, 1, 1], [], []>} : vector<256x64xbf16>, vector<64x128xbf16>, vector<256x128xf32> -> vector<256x128xf32>
    %c0_25 = arith.constant 0 : index
    %c0_26 = arith.constant 0 : index
    %27 = vector.load %arg11[%c0_25, %c0_26] : memref<1x128xf32, #tpu.memory_space<vmem>>, vector<1x128xf32>
    %28 = vector.broadcast %27 : vector<1x128xf32> to vector<256x128xf32>
    %29 = arith.addf %26, %28 : vector<256x128xf32>
    %c0_27 = arith.constant 0 : index
    %c0_28 = arith.constant 0 : index
    %30 = vector.load %arg12[%c0_27, %c0_28] : memref<256x128xf32, #tpu.memory_space<vmem>>, vector<256x128xf32>
    tpu.vector_store %arg12[%c0_27, %c0_28], %29 {strides = array<i32>} : memref<256x128xf32, #tpu.memory_space<vmem>>, vector<256x128xf32>,
    return
  }
  func.func @transform_0(%arg0: i32) -> (i32, i32) {
    %c0_i32 = arith.constant 0 : i32
    %c0_i32_0 = arith.constant 0 : i32
    return %arg0, %c0_i32 : i32, i32
  }
  func.func @transform_1(%arg0: i32) -> (i32, i32) {
    %c0_i32 = arith.constant 0 : i32
    %c0_i32_0 = arith.constant 0 : i32
    return %arg0, %c0_i32 : i32, i32
  }
  func.func @transform_2(%arg0: i32) -> (i32, i32) {
    %c0_i32 = arith.constant 0 : i32
    %c0_i32_0 = arith.constant 0 : i32
    return %arg0, %c0_i32 : i32, i32
  }
  func.func @transform_3(%arg0: i32) -> (i32, i32) {
    %c0_i32 = arith.constant 0 : i32
    %c0_i32_0 = arith.constant 0 : i32
    %c0_i32_1 = arith.constant 0 : i32
    return %c0_i32, %c0_i32_0 : i32, i32
  }
  func.func @transform_4(%arg0: i32) -> (i32, i32) {
    %c0_i32 = arith.constant 0 : i32
    %c0_i32_0 = arith.constant 0 : i32
    %c0_i32_1 = arith.constant 0 : i32
    return %c0_i32, %c0_i32_0 : i32, i32
  }
  func.func @transform_5(%arg0: i32) -> (i32, i32) {
    %c0_i32 = arith.constant 0 : i32
    %c0_i32_0 = arith.constant 0 : i32
    %c0_i32_1 = arith.constant 0 : i32
    return %c0_i32, %c0_i32_0 : i32, i32
  }
  func.func @transform_6(%arg0: i32) -> (i32, i32) {
    %c0_i32 = arith.constant 0 : i32
    %c0_i32_0 = arith.constant 0 : i32
    %c0_i32_1 = arith.constant 0 : i32
    return %c0_i32, %c0_i32_0 : i32, i32
  }
  func.func @transform_7(%arg0: i32) -> (i32, i32) {
    %c0_i32 = arith.constant 0 : i32
    %c0_i32_0 = arith.constant 0 : i32
    %c0_i32_1 = arith.constant 0 : i32
    return %c0_i32, %c0_i32_0 : i32, i32
  }
  func.func @transform_8(%arg0: i32) -> (i32, i32) {
    %c0_i32 = arith.constant 0 : i32
    %c0_i32_0 = arith.constant 0 : i32
    %c0_i32_1 = arith.constant 0 : i32
    return %c0_i32, %c0_i32_0 : i32, i32
  }
  func.func @transform_9(%arg0: i32) -> (i32, i32) {
    %c0_i32 = arith.constant 0 : i32
    %c0_i32_0 = arith.constant 0 : i32
    %c0_i32_1 = arith.constant 0 : i32
    return %c0_i32, %c0_i32_0 : i32, i32
  }
  func.func @transform_10(%arg0: i32) -> (i32, i32) {
    %c0_i32 = arith.constant 0 : i32
    %c0_i32_0 = arith.constant 0 : i32
    %c0_i32_1 = arith.constant 0 : i32
    return %c0_i32, %c0_i32_0 : i32, i32
  }
  func.func @transform_11(%arg0: i32) -> (i32, i32) {
    %c0_i32 = arith.constant 0 : i32
    %c0_i32_0 = arith.constant 0 : i32
    return %arg0, %c0_i32 : i32, i32
  }
}

</mosaic_0001>

<bundles_post_ra>
// kernel: tpu_custom_call.1
= control target key start
LH: loop header
LB: loop body
LE: loop exit
PB: predicated region body
PF: predicated region fallthrough
CT: control target
= control target key end

     0   :  { %16 = vsyncpa [#allocation3], 0  ;;  %s4515_s0 = inlined_call_operand.vmem [shape: bf16[512,320], index: 0, kind: input, shape index: {}]   ;;  %s4516_s1 = inlined_call_operand.vmem [shape: bf16[512,160], index: 1, kind: input, shape index: {}]   ;;  %s4517_s2 = inlined_call_operand.vmem [shape: bf16[512,96], index: 2, kind: input, shape index: {}]   ;;  %s4518_s3 = inlined_call_operand.vmem [shape: bf16[320,128], index: 3, kind: input, shape index: {}]   ;;  %s4519_s4 = inlined_call_operand.vmem [shape: bf16[160,128], index: 4, kind: input, shape index: {}]   ;;  %s4520_s5 = inlined_call_operand.vmem [shape: bf16[96,128], index: 5, kind: input, shape index: {}]   ;;  %s4521_s6 = inlined_call_operand.vmem [shape: f32[1,128], index: 6, kind: input, shape index: {}]   ;;  %s4522_s7 = inlined_call_operand.vmem [shape: bf16[128,64], index: 7, kind: input, shape index: {}]   ;;  %s4523_s8 = inlined_call_operand.vmem [shape: f32[1,64], index: 8, kind: input, shape index: {}]   ;;  %s4524_s9 = inlined_call_operand.vmem [shape: bf16[64,128], index: 9, kind: input, shape index: {}]   ;;  %s4525_s10 = inlined_call_operand.vmem [shape: f32[1,128], index: 10, kind: input, shape index: {}]   ;;  %s4526_s11 = inlined_call_operand.hbm [shape: f32[512,128], index: 11, kind: output, shape index: {}]  }
   0x1   :  { %18 = vsyncpa [#allocation3 + $0x1], 0  ;;  %s3836_s17 = smov 0   ;;  %s3838_s18 = smov 0  }
   0x2   :  { %s3840_s19 = smov 0   ;;  %s3842_s20 = smov 0  }
   0x3 LB: > { %4528 = sst [smem:[#allocation5_spill]] %s3766_s19  ;;  %s3857_s21 = sadd.s32 4294967295, %s3770_s20   ;;  %s3770_s20 = sphi %s3842_s20, %s4536_s20   ;;  %s3766_s19 = sphi %s3840_s19, %s4533_s19   ;;  %s3762_s18 = sphi %s3838_s18, %s4535_s18   ;;  %s3758_s17 = sphi %s3836_s17, %s4534_s17  }
   0x4   : > { %s2889_s22 = sadd.s32 4294967294, %s3770_s20   ;;  %s3861_s23 = sadd.s32 1, %s3770_s20  }
   0x5   : > { %s277_s24 = sadd.s32 1, %s3766_s19  ;;  %s274_s25 = ssub.s32 %s3770_s20, %s3861_s23 }
   0x6   : > { %p287_p0 = scmp.ne.s32.totalorder %s3766_s19, %s3762_s18  ;;  %p275_p1 = scmp.eq.s32.totalorder %s274_s25, 0 }
   0x7   : > { %p288_p2 = scmp.eq.s32.totalorder %s3857_s21, 1  ;;  %p293_p3 = scmp.ne.s32.totalorder %s3762_s18, %s3758_s17 }
   0x8   : > { %p294_p4 = scmp.eq.s32.totalorder %s2889_s22, 1  ;;  %p2892_p7 = scmp.ge.s32.totalorder %s3770_s20, 1 }
   0x9   : > { %s3872_s26 = scalar_select %p275_p1, %s3766_s19, %s277_s24  }
   0xa   : > { %p3874_p5 = por %p288_p2, %p287_p0  ;;  %p3878_p6 = por %p294_p4, %p293_p3 }
   0xb   : > { %4529 = sst [smem:[#allocation6_spill]] %s3872_s26  ;;  %p365_p8 = scmp.lt.s32.totalorder %s3770_s20, 3 }
   0xd   : > { %p366_p9 = pnand %p2892_p7, %p365_p8 }
   0xe   : > { %v3532_v0 = vld [vmem:[%s4519_s4] sm:$0xff] (!%p366_p9)   ;;  %v3772_v1 = vmov (!%p366_p9), 0   ;;  %v3535_v4 = vld [vmem:[%s4519_s4 + $0x8] sm:$0xff] (!%p366_p9)   ;;  %v3538_v7 = vld [vmem:[%s4519_s4 + $0x10] sm:$0xff] (!%p366_p9)   ;;  %s2894_s16 = sshll.u32 (!%p366_p9), %s3857_s21, 5  ;;  %vm799_vm0 = vcmask (!%p366_p9), 261120  }
   0xf   : > { %369 = sbr.rel (%p366_p9) target bundleno = 917 (0x395), region = 64  ;;  %848 = vmatprep.subr.bf16.mxu0 (!%p366_p9), %v3772_v1  ;;  %v3533_v2 = vld [vmem:[%s4518_s3 + $0x40] sm:$0xff] (!%p366_p9)   ;;  %v3536_v5 = vld [vmem:[%s4518_s3 + $0x48] sm:$0xff] (!%p366_p9)   ;;  %v3539_v8 = vld [vmem:[%s4518_s3 + $0x50] sm:$0xff] (!%p366_p9)   ;;  %p418_p10 = scmp.lt.s32.totalorder (!%p366_p9), %s2894_s16, 63  ;;  %vm1369_vm1 = vcmask (!%p366_p9), 523264  }
  0x10   : > { %849 = vmatpush1.bf16.msra.mxu0 (!%p366_p9), %v3532_v0  ;;  %v3534_v3 = vld [vmem:[%s4518_s3] sm:$0xff] (!%p366_p9)   ;;  %3119 = vmatprep.subr.bf16.mxu1 (!%p366_p9), %v3533_v2  ;;  %v3537_v6 = vld [vmem:[%s4518_s3 + $0x8] sm:$0xff] (!%p366_p9)   ;;  %v3540_v9 = vld [vmem:[%s4518_s3 + $0x10] sm:$0xff] (!%p366_p9)   ;;  %vm1900_vm2 = vcmask (!%p366_p9), 785408   ;;  %s414_s12 = sand.u32 (!%p366_p9), 1, %s3762_s18   ;;  %s3118_s24 = sshll.u32 (!%p366_p9), %s3857_s21, 12 }
  0x11   : > { %850 = vmatprep.subr.bf16.mxu0 (!%p366_p9), %v3772_v1  ;;  %3120 = vmatpush3.bf16.msra.mxu1 (!%p366_p9), %v3534_v3  ;;  %v3541_v10 = vld [vmem:[%s4519_s4 + $0x18] sm:$0xff] (!%p366_p9)   ;;  %v3545_v13 = vld [vmem:[%s4518_s3 + $0x60] sm:$0xff] (!%p366_p9)   ;;  %v3548_v16 = vld [vmem:[%s4518_s3 + $0x68] sm:$0xff] (!%p366_p9)   ;;  %s4474_s21 = scalar_lea.sflag (!%p366_p9), [#allocation3], %s414_s12 }
  0x12   : > { %3121 = vmatprep.subr.bf16.mxu1 (!%p366_p9), %v3536_v5  ;;  %v3542_v11 = vld [vmem:[%s4518_s3 + $0x58] sm:$0xff] (!%p366_p9)   ;;  %v3544_v14 = vld [vmem:[%s4519_s4 + $0x20] sm:$0xff] (!%p366_p9)   ;;  %v3547_v17 = vld [vmem:[%s4519_s4 + $0x28] sm:$0xff] (!%p366_p9)  }
  0x13   : > { %v3543_v12 = vld [vmem:[%s4518_s3 + $0x18] sm:$0xff] (!%p366_p9)   ;;  %v3546_v15 = vld [vmem:[%s4518_s3 + $0x20] sm:$0xff] (!%p366_p9)   ;;  %v3549_v18 = vld [vmem:[%s4518_s3 + $0x28] sm:$0xff] (!%p366_p9)  }
  0x14   : > { %851 = vmatpush1.bf16.msra.mxu0 (!%p366_p9), %v3535_v4  ;;  %v3551_v19 = vld [vmem:[%s4518_s3 + $0x70] sm:$0xff] (!%p366_p9)   ;;  %v3554_v22 = vld [vmem:[%s4518_s3 + $0x78] sm:$0xff] (!%p366_p9)   ;;  %v3561_v26 = vld [vmem:[%s4518_s3 + $0x80] sm:$0xff] (!%p366_p9)  }
  0x15   : > { %852 = vmatprep.subr.bf16.mxu0 (!%p366_p9), %v3772_v1  ;;  %3122 = vmatpush3.bf16.msra.mxu1 (!%p366_p9), %v3537_v6  ;;  %v3550_v20 = vld [vmem:[%s4519_s4 + $0x30] sm:$0xff] (!%p366_p9)   ;;  %v3553_v24 = vld [vmem:[%s4519_s4 + $0x38] sm:$0xff] (!%p366_p9)   ;;  %v3559_v28 = vld [vmem:[%s4519_s4 + $0x40] sm:$0xff] (!%p366_p9)  }
  0x16   : > { %3123 = vmatprep.subr.bf16.mxu1 %v3539_v8  ;;  %s4538_s16 = smov (!%p418_p10, %s2894_s16), 63  ;;  %v3552_v21 = vld [vmem:[%s4518_s3 + $0x30] sm:$0xff]   ;;  %v3555_v25 = vld [vmem:[%s4518_s3 + $0x38] sm:$0xff]   ;;  %v3560_v31 = vld [vmem:[%s4519_s4 + $0x48] sm:$0xff]  }
  0x17   : > { %s3489_s22 = smul.u32 12, %s4538_s16  ;;  %s3117_s19 = sshll.u32 %s4538_s16, 3  ;;  %v3567_v32 = vld [vmem:[%s4520_s5] sm:$0xff]   ;;  %v3581_v36 = vld [vmem:[%s4520_s5 + $0x8] sm:$0xff]   ;;  %v3601_v43 = vld [vmem:[%s4520_s5 + $0x10] sm:$0xff]  }
  0x18   : > { %853 = vmatpush1.bf16.msra.mxu0 %v3538_v7  ;;  %s3974_s15 = scalar_lea.vmem %s4516_s1, %s3117_s19  ;;  %v3588_v38 = vld [vmem:[%s4518_s3 + $0x88] sm:$0xff]   ;;  %v3614_v46 = vld [vmem:[%s4518_s3 + $0x90] sm:$0xff]   ;;  %v3620_v49 = vld [vmem:[%s4520_s5 + $0x18] sm:$0xff]   ;;  %s2900_s14 = sshll.u32 %s4538_s16, 2 }
  0x19   : > { %854 = vmatprep.subr.bf16.mxu0 %v3772_v1  ;;  %3124 = vmatpush3.bf16.msra.mxu1 %v3540_v9  ;;  %s3957_s26 = scalar_lea.vmem %s4515_s0, %s3489_s22  ;;  %v3564_v27 = vld [vmem:[%s3974_s15 + $0x4] ss:$8 sps:$4 sm:$0xff]   ;;  %v3562_v33 = vld [vmem:[%s3974_s15] ss:$8 sps:$4 sm:$0xff]   ;;  %v3569_v34 = vld [vmem:[%s3974_s15 + $0x14] ss:$8 sps:$4 sm:$0xff]   ;;  %s4054_s29 = scalar_lea.vmem %s4517_s2, %s2900_s14 }
  0x1a   : > { %3125 = vmatprep.subr.bf16.mxu1 %v3542_v11  ;;  %v3558_v23 = vld [vmem:[%s3957_s26 + $0x4] ss:$12 sps:$4 sm:$0xff]   ;;  %v3556_v29 = vld [vmem:[%s3957_s26] ss:$12 sps:$4 sm:$0xff]   ;;  %2943 = vmatprep.mubr.msk.bf16.mxu0 %vm799_vm0, %v3564_v27  ;;  %v3565_v30 = vld [vmem:[%s3957_s26 + $0x1c] ss:$12 sps:$4 sm:$0xff]  }
  0x1b   : > { %1450 = vmatprep.mubr.bf16.mxu1 %v3558_v23  ;;  %v3568_v35 = vld [vmem:[%s3957_s26 + $0x18] ss:$12 sps:$4 sm:$0xff]   ;;  %v3572_v37 = vld [vmem:[%s3957_s26 + $0x34] ss:$12 sps:$4 sm:$0xff]   ;;  %v3574_v40 = vld [vmem:[%s3957_s26 + $0x30] ss:$12 sps:$4 sm:$0xff]  }
  0x1c   : > { %855 = vmatpush1.bf16.msra.mxu0 %v3541_v10  ;;  %v3571_v39 = vld [vmem:[%s3974_s15 + $0x10] ss:$8 sps:$4 sm:$0xff]   ;;  %v3575_v41 = vld [vmem:[%s3974_s15 + $0x24] ss:$8 sps:$4 sm:$0xff]   ;;  %v3577_v44 = vld [vmem:[%s3974_s15 + $0x20] ss:$8 sps:$4 sm:$0xff]  }
  0x1d   : > { %856 = vmatprep.subr.bf16.mxu0 %v3772_v1  ;;  %3126 = vmatpush3.bf16.msra.mxu1 %v3543_v12  ;;  %v3578_v42 = vld [vmem:[%s3957_s26 + $0x4c] ss:$12 sps:$4 sm:$0xff]   ;;  %v3582_v45 = vld [vmem:[%s3974_s15 + $0x34] ss:$8 sps:$4 sm:$0xff]   ;;  %v3585_v48 = vld [vmem:[%s3957_s26 + $0x64] ss:$12 sps:$4 sm:$0xff]  }
  0x1e   : > { %3127 = vmatprep.subr.bf16.mxu1 %v3545_v13  ;;  %v3580_v47 = vld [vmem:[%s3957_s26 + $0x48] ss:$12 sps:$4 sm:$0xff]   ;;  %v3584_v50 = vld [vmem:[%s3974_s15 + $0x30] ss:$8 sps:$4 sm:$0xff]   ;;  %v3589_v51 = vld [vmem:[%s3974_s15 + $0x44] ss:$8 sps:$4 sm:$0xff]  }
  0x1f   : > { %v3587_v52 = vld [vmem:[%s3957_s26 + $0x60] ss:$12 sps:$4 sm:$0xff]   ;;  %v3592_v53 = vld [vmem:[%s3957_s26 + $0x7c] ss:$12 sps:$4 sm:$0xff]   ;;  %v3594_v58 = vld [vmem:[%s3957_s26 + $0x78] ss:$12 sps:$4 sm:$0xff]  }
  0x20   : > { %857 = vmatpush1.bf16.msra.mxu0 %v3544_v14  ;;  %v3634_v54 = vld [vmem:[%s4520_s5 + $0x20] sm:$0xff]   ;;  %v3641_v55 = vld [vmem:[%s4518_s3 + $0x98] sm:$0xff]   ;;  %v3654_v60 = vld [vmem:[%s4520_s5 + $0x28] sm:$0xff]   ;;  %s2893_s22 = sshll.u32 %s414_s12, 8  ;;  %s3773_s19 = smov [#allocation2]  }
  0x21   : > { %858 = vmatprep.subr.bf16.mxu0 %v3772_v1  ;;  %3128 = vmatpush3.bf16.msra.mxu1 %v3546_v15  ;;  %v3591_v56 = vld [vmem:[%s3974_s15 + $0x40] ss:$8 sps:$4 sm:$0xff]   ;;  %v3595_v57 = vld [vmem:[%s3974_s15 + $0x54] ss:$8 sps:$4 sm:$0xff]   ;;  %v3597_v61 = vld [vmem:[%s3974_s15 + $0x50] ss:$8 sps:$4 sm:$0xff]  }
  0x22   : > { %3129 = vmatprep.subr.bf16.mxu1 %v3548_v16  ;;  %v3598_v59 = vld [vmem:[%s3957_s26 + $0x94] ss:$12 sps:$4 sm:$0xff]   ;;  %v3602_v62 = vld [vmem:[%s3974_s15 + $0x64] ss:$8 sps:$4 sm:$0xff]   ;;  %v3600_v63 = vld [vmem:[%s3957_s26 + $0x90] ss:$12 sps:$4 sm:$0xff]  }
  0x23   : > { %v3605_v0 = vld [vmem:[%s3957_s26 + $0xac] ss:$12 sps:$4 sm:$0xff]   ;;  %v3608_v2 = vld [vmem:[%s3974_s15 + $0x74] ss:$8 sps:$4 sm:$0xff]   ;;  %v3611_v4 = vld [vmem:[%s3957_s26 + $0xc4] ss:$12 sps:$4 sm:$0xff]  }
  0x24   : > { %859 = vmatpush1.bf16.msra.mxu0 %v3547_v17  ;;  %v3607_v3 = vld [vmem:[%s3957_s26 + $0xa8] ss:$12 sps:$4 sm:$0xff]   ;;  %v3610_v5 = vld [vmem:[%s3974_s15 + $0x70] ss:$8 sps:$4 sm:$0xff]   ;;  %v3615_v6 = vld [vmem:[%s3974_s15 + $0x84] ss:$8 sps:$4 sm:$0xff]  }
  0x25   : > { %860 = vmatprep.subr.bf16.mxu0 %v3772_v1  ;;  %3130 = vmatpush3.bf16.msra.mxu1 %v3549_v18  ;;  %v3613_v7 = vld [vmem:[%s3957_s26 + $0xc0] ss:$12 sps:$4 sm:$0xff]   ;;  %v3618_v8 = vld [vmem:[%s3957_s26 + $0xdc] ss:$12 sps:$4 sm:$0xff]   ;;  %v3621_v11 = vld [vmem:[%s3957_s26 + $0xd8] ss:$12 sps:$4 sm:$0xff]  }
  0x26   : > { %3131 = vmatprep.subr.bf16.mxu1 %v3551_v19  ;;  %v3617_v9 = vld [vmem:[%s3974_s15 + $0x80] ss:$8 sps:$4 sm:$0xff]   ;;  %v3622_v10 = vld [vmem:[%s3974_s15 + $0x94] ss:$8 sps:$4 sm:$0xff]   ;;  %v3624_v13 = vld [vmem:[%s3974_s15 + $0x90] ss:$8 sps:$4 sm:$0xff]  }
  0x27   : > { %v3625_v12 = vld [vmem:[%s3957_s26 + $0xf4] ss:$12 sps:$4 sm:$0xff]   ;;  %v3627_v14 = vld [vmem:[%s3957_s26 + $0xf0] ss:$12 sps:$4 sm:$0xff]   ;;  %v3628_v15 = vld [vmem:[%s3974_s15 + $0xa4] ss:$8 sps:$4 sm:$0xff]  }
  0x28   : > { %861 = vmatpush1.bf16.msra.mxu0 %v3550_v20  ;;  %v3631_v16 = vld [vmem:[%s3957_s26 + $0x10c] ss:$12 sps:$4 sm:$0xff]   ;;  %v3630_v17 = vld [vmem:[%s3974_s15 + $0xa0] ss:$8 sps:$4 sm:$0xff]   ;;  %v3635_v18 = vld [vmem:[%s3974_s15 + $0xb4] ss:$8 sps:$4 sm:$0xff]  }
  0x29   : > { %862 = vmatprep.subr.bf16.mxu0 %v3772_v1  ;;  %3132 = vmatpush3.bf16.msra.mxu1 %v3552_v21  ;;  %v3633_v19 = vld [vmem:[%s3957_s26 + $0x108] ss:$12 sps:$4 sm:$0xff]   ;;  %v3638_v20 = vld [vmem:[%s3957_s26 + $0x124] ss:$12 sps:$4 sm:$0xff]   ;;  %v3640_v23 = vld [vmem:[%s3957_s26 + $0x120] ss:$12 sps:$4 sm:$0xff]  }
  0x2a   : > { %3133 = vmatprep.subr.bf16.mxu1 %v3554_v22  ;;  %v3637_v21 = vld [vmem:[%s3974_s15 + $0xb0] ss:$8 sps:$4 sm:$0xff]   ;;  %v3642_v22 = vld [vmem:[%s3974_s15 + $0xc4] ss:$8 sps:$4 sm:$0xff]  }
  0x2b   : > { %v3647_v27 = vld [vmem:[%s3957_s26 + $0x138] ss:$12 sps:$4 sm:$0xff]  }
  0x2c   : > { %863 = vmatpush1.bf16.msra.mxu0 %v3553_v24  ;;  %v3645_v24 = vld [vmem:[%s3957_s26 + $0x13c] ss:$12 sps:$4 sm:$0xff]  }
  0x2d   : > { %864 = vmatprep.subr.bf16.mxu0 %v3772_v1  ;;  %3134 = vmatpush3.bf16.msra.mxu1 %v3555_v25  ;;  %v3644_v25 = vld [vmem:[%s3974_s15 + $0xc0] ss:$8 sps:$4 sm:$0xff]  }
  0x2e   : > { %3317 = vmatprep.subr.bf16.mxu1 %v3561_v26 }
  0x30   : > { %865 = vmatpush1.bf16.msra.mxu0 %v3559_v28  ;;  %1451 = vmatmul.mubr.bf16.vlgmr.msra.gmra.mrb[0].mxu1 %v3556_v29  ;;  %v3651_v28 = vld [vmem:[%s3957_s26 + $0x154] ss:$12 sps:$4 sm:$0xff]   ;;  %v3650_v29 = vld [vmem:[%s3974_s15 + $0xd0] ss:$8 sps:$4 sm:$0xff]  }
  0x31   : > { %866 = vmatprep.subr.bf16.mxu0 %v3772_v1  ;;  %3318 = vmatpush3.bf16.msra.mxu1 %v3561_v26  ;;  %v3604_v1 = vld [vmem:[%s3974_s15 + $0x60] ss:$8 sps:$4 sm:$0xff]   ;;  %v3648_v26 = vld [vmem:[%s3974_s15 + $0xd4] ss:$8 sps:$4 sm:$0xff]  }
  0x32   : > { %1458 = vmatprep.mubr.bf16.mxu1 %v3565_v30  ;;  %3319 = vmatprep.subr.bf16.mxu1 %v3588_v38  ;;  %v3655_v30 = vld [vmem:[%s3974_s15 + $0xe4] ss:$8 sps:$4 sm:$0xff]  }
  0x34   : > { %867 = vmatpush1.bf16.msra.mxu0 %v3560_v31  ;;  %v3653_v31 = vld [vmem:[%s3957_s26 + $0x150] ss:$12 sps:$4 sm:$0xff]  }
  0x35   : > { %3357 = vmatprep.subr.bf16.mxu0 %v3567_v32  ;;  %3320 = vmatpush3.bf16.msra.mxu1 %v3588_v38  ;;  %v3666_v38 = vld [vmem:[%s4054_s29] sm:$0xff]  }
  0x36   : > { %3321 = vmatprep.subr.bf16.mxu1 %v3614_v46 }
  0x37   : > { %881 = vmatmul.mubr.bf16.vlgmr.msra.gmra.mrb[0].mxu0 %v3562_v33  ;;  %v3657_v33 = vld [vmem:[%s3974_s15 + $0xe0] ss:$8 sps:$4 sm:$0xff]  }
  0x38   : > { %3358 = vmatpush3.bf16.msra.mxu0 %v3567_v32  ;;  %2944 = vmatprep.mubr.msk.bf16.mxu0 %vm799_vm0, %v3569_v34  ;;  %v3658_v32 = vld [vmem:[%s3957_s26 + $0x16c] ss:$12 sps:$4 sm:$0xff]   ;;  %v3661_v34 = vld [vmem:[%s3974_s15 + $0xf4] ss:$8 sps:$4 sm:$0xff]  }
  0x39   : > { %1459 = vmatmul.mubr.bf16.gmra.mrb[4].mxu1 %v3568_v35  ;;  %3359 = vmatprep.subr.bf16.mxu0 %v3581_v36  ;;  %v3660_v35 = vld [vmem:[%s3957_s26 + $0x168] ss:$12 sps:$4 sm:$0xff]  }
  0x3a   : > { %1466 = vmatprep.mubr.bf16.mxu1 %v3572_v37  ;;  %3322 = vmatpush3.bf16.msra.mxu1 %v3614_v46  ;;  %v3663_v37 = vld [vmem:[%s3974_s15 + $0xf0] ss:$8 sps:$4 sm:$0xff]   ;;  %v3674_v46 = vld [vmem:[%s4054_s29 + $0x20] sm:$0xff]   ;;  %s4464_s15 = scalar_lea.hbm %s4526_s11, %s3118_s24 }
  0x3b   : > { %3323 = vmatprep.subr.bf16.mxu1 %v3641_v55 }
  0x3c   : > { %3360 = vmatpush3.bf16.msra.mxu0 %v3581_v36  ;;  %v3664_v36 = vld [vmem:[%s3957_s26 + $0x8] ss:$12 sps:$4 sm:$0xff]  }
  0x3d   : > { %3361 = vmatprep.subr.bf16.mxu0 %v3601_v43 }
  0x3e   : > { %3324 = vmatpush3.bf16.msra.mxu1 %v3641_v55  ;;  %v3681_v55 = vld [vmem:[%s3957_s26 + $0xe0] ss:$12 sps:$4 sm:$0xff]  }
  0x3f   : > { %889 = vmatmul.mubr.bf16.gmra.mrb[4].mxu0 %v3571_v39  ;;  %v3665_v39 = vld [vmem:[%s3957_s26 + $0x20] ss:$12 sps:$4 sm:$0xff]  }
  0x40   : > { %2945 = vmatprep.mubr.msk.bf16.mxu0 %vm799_vm0, %v3575_v41  ;;  %3362 = vmatpush3.bf16.msra.mxu0 %v3601_v43  ;;  %v3668_v41 = vld [vmem:[%s4054_s29 + $0x8] sm:$0xff]   ;;  %v3669_v43 = vld [vmem:[%s3957_s26 + $0x50] ss:$12 sps:$4 sm:$0xff]  }
  0x41   : > { %1467 = vmatmul.mubr.bf16.gmra.mrb[8].mxu1 %v3574_v40  ;;  %3363 = vmatprep.subr.bf16.mxu0 %v3620_v49  ;;  %v3667_v40 = vld [vmem:[%s3957_s26 + $0x38] ss:$12 sps:$4 sm:$0xff]  }
  0x42   : > { %1474 = vmatprep.mubr.bf16.mxu1 %v3578_v42  ;;  %v3670_v42 = vld [vmem:[%s4054_s29 + $0x10] sm:$0xff]  }
  0x44   : > { %3364 = vmatpush3.bf16.msra.mxu0 %v3620_v49  ;;  %v3676_v49 = vld [vmem:[%s4054_s29 + $0x28] sm:$0xff]  }
  0x45   : > { %3365 = vmatprep.subr.bf16.mxu0 %v3634_v54 }
  0x47   : > { %897 = vmatmul.mubr.bf16.gmra.mrb[8].mxu0 %v3577_v44  ;;  %v3671_v44 = vld [vmem:[%s3957_s26 + $0x68] ss:$12 sps:$4 sm:$0xff]  }
  0x48   : > { %2946 = vmatprep.mubr.msk.bf16.mxu0 %vm799_vm0, %v3582_v45  ;;  %3366 = vmatpush3.bf16.msra.mxu0 %v3634_v54  ;;  %v3672_v45 = vld [vmem:[%s4054_s29 + $0x18] sm:$0xff]   ;;  %v3682_v54 = vld [vmem:[%s4054_s29 + $0x40] sm:$0xff]  }
  0x49   : > { %1475 = vmatmul.mubr.bf16.gmra.mrb[12].mxu1 %v3580_v47  ;;  %3367 = vmatprep.subr.bf16.mxu0 %v3654_v60  ;;  %v3673_v47 = vld [vmem:[%s3957_s26 + $0x80] ss:$12 sps:$4 sm:$0xff]  }
  0x4a   : > { %1482 = vmatprep.mubr.bf16.mxu1 %v3585_v48  ;;  %v3675_v48 = vld [vmem:[%s3957_s26 + $0x98] ss:$12 sps:$4 sm:$0xff]  }
  0x4c   : > { %3368 = vmatpush3.bf16.msra.mxu0 %v3654_v60  ;;  %v3687_v60 = vld [vmem:[%s3957_s26 + $0x128] ss:$12 sps:$4 sm:$0xff]  }
  0x4f   : > { %905 = vmatmul.mubr.bf16.gmra.mrb[12].mxu0 %v3584_v50  ;;  %v3678_v50 = vld [vmem:[%s4054_s29 + $0x30] sm:$0xff]  }
  0x50   : > { %2947 = vmatprep.mubr.msk.bf16.mxu0 %vm799_vm0, %v3589_v51  ;;  %v3677_v51 = vld [vmem:[%s3957_s26 + $0xb0] ss:$12 sps:$4 sm:$0xff]  }
  0x51   : > { %1483 = vmatmul.mubr.bf16.gmra.mrb[16].mxu1 %v3587_v52  ;;  %v3679_v52 = vld [vmem:[%s3957_s26 + $0xc8] ss:$12 sps:$4 sm:$0xff]  }
  0x52   : > { %1490 = vmatprep.mubr.bf16.mxu1 %v3592_v53  ;;  %v3680_v53 = vld [vmem:[%s4054_s29 + $0x38] sm:$0xff]  }
  0x57   : > { %913 = vmatmul.mubr.bf16.gmra.mrb[16].mxu0 %v3591_v56  ;;  %v3683_v56 = vld [vmem:[%s3957_s26 + $0xf8] ss:$12 sps:$4 sm:$0xff]  }
  0x58   : > { %2948 = vmatprep.mubr.msk.bf16.mxu0 %vm799_vm0, %v3595_v57  ;;  %v3684_v57 = vld [vmem:[%s4054_s29 + $0x48] sm:$0xff]  }
  0x59   : > { %1491 = vmatmul.mubr.bf16.gmra.mrb[20].mxu1 %v3594_v58  ;;  %v3686_v58 = vld [vmem:[%s4054_s29 + $0x50] sm:$0xff]  }
  0x5a   : > { %1498 = vmatprep.mubr.bf16.mxu1 %v3598_v59  ;;  %v3685_v59 = vld [vmem:[%s3957_s26 + $0x110] ss:$12 sps:$4 sm:$0xff]  }
  0x5f   : > { %921 = vmatmul.mubr.bf16.gmra.mrb[20].mxu0 %v3597_v61  ;;  %v3696_v61 = vld [vmem:[%s4522_s7] sm:$0xff]  }
  0x60   : > { %2949 = vmatprep.mubr.msk.bf16.mxu0 %vm799_vm0, %v3602_v62  ;;  %3401 = vmatprep.subr.bf16.mxu1 %v3696_v61  ;;  %v3688_v62 = vld [vmem:[%s4054_s29 + $0x58] sm:$0xff]  }
  0x61   : > { %1499 = vmatmul.mubr.bf16.gmra.mrb[24].mxu1 %v3600_v63  ;;  %v3690_v63 = vld [vmem:[%s4054_s29 + $0x60] sm:$0xff]  }
  0x62   : > { %1506 = vmatprep.mubr.bf16.mxu1 %v3605_v0  ;;  %v3689_v0 = vld [vmem:[%s3957_s26 + $0x140] ss:$12 sps:$4 sm:$0xff]  }
  0x67   : > { %929 = vmatmul.mubr.bf16.gmra.mrb[24].mxu0 %v3604_v1  ;;  %v3691_v1 = vld [vmem:[%s3957_s26 + $0x158] ss:$12 sps:$4 sm:$0xff]  }
  0x68   : > { %2950 = vmatprep.mubr.msk.bf16.mxu0 %vm799_vm0, %v3608_v2  ;;  %v3697_v2 = vld [vmem:[%s4522_s7 + $0x8] sm:$0xff]  }
  0x69   : > { %1507 = vmatmul.mubr.bf16.gmra.mrb[28].mxu1 %v3607_v3  ;;  %v3692_v3 = vld [vmem:[%s4054_s29 + $0x68] sm:$0xff]  }
  0x6a   : > { %1514 = vmatprep.mubr.bf16.mxu1 %v3611_v4  ;;  %v3694_v4 = vld [vmem:[%s4054_s29 + $0x70] sm:$0xff]  }
  0x6f   : > { %937 = vmatmul.mubr.bf16.gmra.mrb[28].mxu0 %v3610_v5  ;;  %v3693_v5 = vld [vmem:[%s3957_s26 + $0x170] ss:$12 sps:$4 sm:$0xff]   ;;  %s4399_s26 = scalar_lea.vmem [#allocation2], %s2893_s22  ;;  %s3712_s22 = sshll.u32 %s3773_s19, 4  ;;  %s3713_s22 = int_to_ptr.vmem [resolvable:$false] %s3712_s22 }
  0x70   : > { %2951 = vmatprep.mubr.msk.bf16.mxu0 %vm799_vm0, %v3615_v6  ;;  %v3698_v6 = vld [vmem:[%s4522_s7 + $0x10] sm:$0xff]   ;;  %s2803_s25 = sshll.u32 %s4399_s26, 4  ;;  %s3714_s13 = scalar_lea.vmem %s3713_s22, 8192  ;;  %s4466_s25 = int_to_ptr.vmem [resolvable:$true] %s2803_s25 }
  0x71   : > { %1515 = vmatmul.mubr.bf16.gmra.mrb[32].mxu1 %v3613_v7  ;;  %v3695_v7 = vld [vmem:[%s4054_s29 + $0x78] sm:$0xff]   ;;  %s3708_s30 = scalar_lea.vmem %s4466_s25, 4096  ;;  %p3715_p0 = scmp.lt.s32.totalorder %s4466_s25, %s3713_s22 }
  0x72   : > { %1522 = vmatprep.mubr.bf16.mxu1 %v3618_v8  ;;  %v3699_v8 = vld [vmem:[%s4522_s7 + $0x18] sm:$0xff]   ;;  %p3709_p11 = scmp.ne.s32.totalorder %s4466_s25, %s3708_s30  ;;  %p3716_p1 = scmp.lt.s32.totalorder %s3714_s13, %s3708_s30 }
  0x74   : > { %p3710_p12 = pnand %p3709_p11, %p3874_p5  ;;  %p3717_p2 = por %p3716_p1, %p3715_p0 }
  0x76   : > { %p3711_p13 = pneg %p3710_p12 }
  0x77   : > { %945 = vmatmul.mubr.bf16.gmra.mrb[32].mxu0 %v3617_v9  ;;  %v3700_v9 = vld [vmem:[%s4522_s7 + $0x20] sm:$0xff]  }
  0x78   : > { %2952 = vmatprep.mubr.msk.bf16.mxu0 %vm799_vm0, %v3622_v10  ;;  %v3701_v10 = vld [vmem:[%s4522_s7 + $0x28] sm:$0xff]   ;;  %p3718_p3 = pnand %p3717_p2, %p3711_p13 }
  0x79   : > { %1523 = vmatmul.mubr.bf16.gmra.mrb[36].mxu1 %v3621_v11 }
  0x7a   : > { %1530 = vmatprep.mubr.bf16.mxu1 %v3625_v12 }
  0x7f   : > { %953 = vmatmul.mubr.bf16.gmra.mrb[36].mxu0 %v3624_v13 }
  0x80   : > { %2953 = vmatprep.mubr.msk.bf16.mxu0 %vm799_vm0, %v3628_v15 }
  0x81   : > { %1531 = vmatmul.mubr.bf16.gmra.mrb[40].mxu1 %v3627_v14 }
  0x82   : > { %1538 = vmatprep.mubr.bf16.mxu1 %v3631_v16 }
  0x87   : > { %961 = vmatmul.mubr.bf16.gmra.mrb[40].mxu0 %v3630_v17  ;;  %v3702_v17 = vld [vmem:[%s4522_s7 + $0x30] sm:$0xff]  }
  0x88   : > { %2954 = vmatprep.mubr.msk.bf16.mxu0 %vm799_vm0, %v3635_v18 }
  0x89   : > { %1539 = vmatmul.mubr.bf16.gmra.mrb[44].mxu1 %v3633_v19 }
  0x8a   : > { %1546 = vmatprep.mubr.bf16.mxu1 %v3638_v20 }
  0x8f   : > { %969 = vmatmul.mubr.bf16.gmra.mrb[44].mxu0 %v3637_v21 }
  0x90   : > { %2955 = vmatprep.mubr.msk.bf16.mxu0 %vm799_vm0, %v3642_v22 }
  0x91   : > { %1547 = vmatmul.mubr.bf16.gmra.mrb[48].mxu1 %v3640_v23 }
  0x92   : > { %1554 = vmatprep.mubr.bf16.mxu1 %v3645_v24 }
  0x97   : > { %977 = vmatmul.mubr.bf16.gmra.mrb[48].mxu0 %v3644_v25 }
  0x98   : > { %2956 = vmatprep.mubr.msk.bf16.mxu0 %vm799_vm0, %v3648_v26 }
  0x99   : > { %1555 = vmatmul.mubr.bf16.gmra.mrb[52].mxu1 %v3647_v27 }
  0x9a   : > { %1562 = vmatprep.mubr.bf16.mxu1 %v3651_v28 }
  0x9f   : > { %985 = vmatmul.mubr.bf16.gmra.mrb[52].mxu0 %v3650_v29 }
  0xa0   : > { %2957 = vmatprep.mubr.msk.bf16.mxu0 %vm799_vm0, %v3655_v30 }
  0xa1   : > { %1563 = vmatmul.mubr.bf16.gmra.mrb[56].mxu1 %v3653_v31  ;;  %v3703_v31 = vld [vmem:[%s4522_s7 + $0x38] sm:$0xff]  }
  0xa2   : > { %1570 = vmatprep.mubr.bf16.mxu1 %v3658_v32 }
  0xa7   : > { %993 = vmatmul.mubr.bf16.gmra.mrb[56].mxu0 %v3657_v33 }
  0xa8   : > { %2958 = vmatprep.mubr.msk.bf16.mxu0 %vm799_vm0, %v3661_v34 }
  0xa9   : > { %1571 = vmatmul.mubr.bf16.gmra.mrb[60].mxu1 %v3660_v35 }
  0xaa   : > { %3325 = vmatprep.mubr.msk.bf16.mxu1 %vm1369_vm1, %v3664_v36 }
  0xaf   : > { %1001 = vmatmul.mubr.bf16.gmra.mrb[60].mxu0 %v3663_v37 }
  0xb0   : > { %3369 = vmatprep.mubr.msk.bf16.mxu0 %vm1900_vm2, %v3666_v38 }
  0xb1   : > { %3326 = vmatmul.mubr.msk.bf16.vlgmr.msra.gmra.mrb[64].mxu1 %vm1369_vm1, %v3665_v39 }
  0xb2   : > { %3329 = vmatprep.mubr.msk.bf16.mxu1 %vm1369_vm1, %v3667_v40  ;;  %3402 = vmatpush3.bf16.msra.mxu1 %v3696_v61 }
  0xb3   : > { %3403 = vmatprep.subr.bf16.mxu1 %v3697_v2 }
  0xb6   : > { %3404 = vmatpush3.bf16.msra.mxu1 %v3697_v2 }
  0xb7   : > { %3370 = vmatmul.mubr.msk.bf16.vlgmr.msra.gmra.mrb[64].mxu0 %vm1900_vm2, %v3668_v41  ;;  %3405 = vmatprep.subr.bf16.mxu1 %v3698_v6 }
  0xb8   : > { %3373 = vmatprep.mubr.msk.bf16.mxu0 %vm1900_vm2, %v3670_v42 }
  0xb9   : > { %3330 = vmatmul.mubr.msk.bf16.gmra.mrb[68].mxu1 %vm1369_vm1, %v3669_v43 }
  0xba   : > { %3333 = vmatprep.mubr.msk.bf16.mxu1 %vm1369_vm1, %v3671_v44  ;;  %3406 = vmatpush3.bf16.msra.mxu1 %v3698_v6 }
  0xbb   : > { %3407 = vmatprep.subr.bf16.mxu1 %v3699_v8 }
  0xbe   : > { %3408 = vmatpush3.bf16.msra.mxu1 %v3699_v8 }
  0xbf   : > { %3374 = vmatmul.mubr.msk.bf16.gmra.mrb[68].mxu0 %vm1900_vm2, %v3672_v45  ;;  %3409 = vmatprep.subr.bf16.mxu1 %v3700_v9 }
  0xc0   : > { %3377 = vmatprep.mubr.msk.bf16.mxu0 %vm1900_vm2, %v3674_v46 }
  0xc1   : > { %3334 = vmatmul.mubr.msk.bf16.gmra.mrb[72].mxu1 %vm1369_vm1, %v3673_v47 }
  0xc2   : > { %3337 = vmatprep.mubr.msk.bf16.mxu1 %vm1369_vm1, %v3675_v48  ;;  %3410 = vmatpush3.bf16.msra.mxu1 %v3700_v9 }
  0xc3   : > { %3411 = vmatprep.subr.bf16.mxu1 %v3701_v10 }
  0xc6   : > { %3412 = vmatpush3.bf16.msra.mxu1 %v3701_v10 }
  0xc7   : > { %3378 = vmatmul.mubr.msk.bf16.gmra.mrb[72].mxu0 %vm1900_vm2, %v3676_v49  ;;  %3413 = vmatprep.subr.bf16.mxu1 %v3702_v17 }
  0xc8   : > { %3381 = vmatprep.mubr.msk.bf16.mxu0 %vm1900_vm2, %v3678_v50 }
  0xc9   : > { %3338 = vmatmul.mubr.msk.bf16.gmra.mrb[76].mxu1 %vm1369_vm1, %v3677_v51 }
  0xca   : > { %3341 = vmatprep.mubr.msk.bf16.mxu1 %vm1369_vm1, %v3679_v52  ;;  %3414 = vmatpush3.bf16.msra.mxu1 %v3702_v17 }
  0xcb   : > { %3415 = vmatprep.subr.bf16.mxu1 %v3703_v31 }
  0xce   : > { %3416 = vmatpush3.bf16.msra.mxu1 %v3703_v31 }
  0xcf   : > { %3382 = vmatmul.mubr.msk.bf16.gmra.mrb[76].mxu0 %vm1900_vm2, %v3680_v53 }
  0xd0   : > { %3385 = vmatprep.mubr.msk.bf16.mxu0 %vm1900_vm2, %v3682_v54 }
  0xd1   : > { %3342 = vmatmul.mubr.msk.bf16.gmra.mrb[80].mxu1 %vm1369_vm1, %v3681_v55 }
  0xd2   : > { %3345 = vmatprep.mubr.msk.bf16.mxu1 %vm1369_vm1, %v3683_v56 }
  0xd7   : > { %3386 = vmatmul.mubr.msk.bf16.gmra.mrb[80].mxu0 %vm1900_vm2, %v3684_v57 }
  0xd8   : > { %3389 = vmatprep.mubr.msk.bf16.mxu0 %vm1900_vm2, %v3686_v58 }
  0xd9   : > { %3346 = vmatmul.mubr.msk.bf16.gmra.mrb[84].mxu1 %vm1369_vm1, %v3685_v59 }
  0xda   : > { %3349 = vmatprep.mubr.msk.bf16.mxu1 %vm1369_vm1, %v3687_v60 }
  0xdf   : > { %3390 = vmatmul.mubr.msk.bf16.gmra.mrb[84].mxu0 %vm1900_vm2, %v3688_v62 }
  0xe0   : > { %3393 = vmatprep.mubr.msk.bf16.mxu0 %vm1900_vm2, %v3690_v63 }
  0xe1   : > { %3350 = vmatmul.mubr.msk.bf16.gmra.mrb[88].mxu1 %vm1369_vm1, %v3689_v0 }
  0xe2   : > { %3353 = vmatprep.mubr.msk.bf16.mxu1 %vm1369_vm1, %v3691_v1 }
  0xe7   : > { %3394 = vmatmul.mubr.msk.bf16.gmra.mrb[88].mxu0 %vm1900_vm2, %v3692_v3 }
  0xe8   : > { %3397 = vmatprep.mubr.msk.bf16.mxu0 %vm1900_vm2, %v3694_v4 }
  0xe9   : > { %3354 = vmatmul.mubr.msk.bf16.gmra.mrb[92].mxu1 %vm1369_vm1, %v3693_v5 }
  0xef   : > { %3398 = vmatmul.mubr.msk.bf16.gmra.mrb[92].mxu0 %vm1900_vm2, %v3695_v7 }
 0x103   : > { %v3135_v11 = vpop.f32.mrb[0].mxu1 }
 0x104   : > { %v3136_v12 = vpop.f32.mrb[1].mxu1 }
 0x105   : > { %v3137_v13 = vadd.f32 %v3136_v12, %v3135_v11  ;;  %v3138_v14 = vpop.f32.mrb[2].mxu1 }
 0x106   : > { %v3139_v15 = vpop.f32.mrb[3].mxu1 }
 0x107   : > { %v3140_v16 = vadd.f32 %v3139_v15, %v3138_v14 }
 0x10a   : > { %v882_v18 = vpop.f32.mrb[0].mxu0 }
 0x10b   : > { %v4188_v19 = vadd.f32 %v3137_v13, %v882_v18  ;;  %v884_v20 = vpop.f32.mrb[1].mxu0 }
 0x10c   : > { %v885_v21 = vpop.f32.mrb[2].mxu0  ;;  %v3141_v22 = vpop.f32.mrb[4].mxu1 }
 0x10d   : > { %v4190_v23 = vadd.f32 %v3140_v16, %v885_v21  ;;  %v887_v24 = vpop.f32.mrb[3].mxu0  ;;  %v3142_v25 = vpop.f32.mrb[5].mxu1 }
 0x10e   : > { %v3143_v26 = vadd.f32 %v3142_v25, %v3141_v22  ;;  %v3144_v27 = vpop.f32.mrb[6].mxu1 }
 0x10f   : > { %v3145_v28 = vpop.f32.mrb[7].mxu1 }
 0x110   : > { %v3146_v29 = vadd.f32 %v3145_v28, %v3144_v27 }
 0x112   : > { %v890_v30 = vpop.f32.mrb[4].mxu0 }
 0x113   : > { %v4195_v32 = vadd.f32 %v3143_v26, %v890_v30  ;;  %v892_v33 = vpop.f32.mrb[5].mxu0 }
 0x114   : > { %v893_v34 = vpop.f32.mrb[6].mxu0  ;;  %v3147_v35 = vpop.f32.mrb[8].mxu1 }
 0x115   : > { %v4197_v36 = vadd.f32 %v3146_v29, %v893_v34  ;;  %v895_v37 = vpop.f32.mrb[7].mxu0  ;;  %v3148_v38 = vpop.f32.mrb[9].mxu1 }
 0x116   : > { %v3149_v39 = vadd.f32 %v3148_v38, %v3147_v35  ;;  %v3150_v40 = vpop.f32.mrb[10].mxu1 }
 0x117   : > { %v3151_v41 = vpop.f32.mrb[11].mxu1 }
 0x118   : > { %v3152_v42 = vadd.f32 %v3151_v41, %v3150_v40 }
 0x11a   : > { %v898_v43 = vpop.f32.mrb[8].mxu0 }
 0x11b   : > { %v4199_v44 = vadd.f32 %v3149_v39, %v898_v43  ;;  %v900_v45 = vpop.f32.mrb[9].mxu0 }
 0x11c   : > { %v901_v46 = vpop.f32.mrb[10].mxu0  ;;  %v3153_v47 = vpop.f32.mrb[12].mxu1 }
 0x11d   : > { %v4201_v48 = vadd.f32 %v3152_v42, %v901_v46  ;;  %v903_v49 = vpop.f32.mrb[11].mxu0  ;;  %v3154_v50 = vpop.f32.mrb[13].mxu1 }
 0x11e   : > { %v3155_v51 = vadd.f32 %v3154_v50, %v3153_v47  ;;  %v3156_v52 = vpop.f32.mrb[14].mxu1 }
 0x11f   : > { %v3157_v53 = vpop.f32.mrb[15].mxu1 }
 0x120   : > { %v3158_v54 = vadd.f32 %v3157_v53, %v3156_v52 }
 0x122   : > { %v906_v55 = vpop.f32.mrb[12].mxu0 }
 0x123   : > { %v4203_v56 = vadd.f32 %v3155_v51, %v906_v55  ;;  %v908_v57 = vpop.f32.mrb[13].mxu0 }
 0x124   : > { %v909_v58 = vpop.f32.mrb[14].mxu0  ;;  %v3159_v59 = vpop.f32.mrb[16].mxu1 }
 0x125   : > { %v4205_v60 = vadd.f32 %v3158_v54, %v909_v58  ;;  %v911_v61 = vpop.f32.mrb[15].mxu0  ;;  %v3160_v62 = vpop.f32.mrb[17].mxu1 }
 0x126   : > { %v3161_v63 = vadd.f32 %v3160_v62, %v3159_v59  ;;  %v3162_v0 = vpop.f32.mrb[18].mxu1 }
 0x127   : > { %v3163_v1 = vpop.f32.mrb[19].mxu1 }
 0x128   : > { %v3164_v2 = vadd.f32 %v3163_v1, %v3162_v0 }
 0x12a   : > { %v914_v3 = vpop.f32.mrb[16].mxu0 }
 0x12b   : > { %v4207_v4 = vadd.f32 %v3161_v63, %v914_v3  ;;  %v916_v5 = vpop.f32.mrb[17].mxu0 }
 0x12c   : > { %v917_v6 = vpop.f32.mrb[18].mxu0  ;;  %v3165_v7 = vpop.f32.mrb[20].mxu1 }
 0x12d   : > { %v4209_v8 = vadd.f32 %v3164_v2, %v917_v6  ;;  %v919_v9 = vpop.f32.mrb[19].mxu0  ;;  %v3166_v10 = vpop.f32.mrb[21].mxu1 }
 0x12e   : > { %v3167_v11 = vadd.f32 %v3166_v10, %v3165_v7  ;;  %v3168_v12 = vpop.f32.mrb[22].mxu1  ;;  %v3704_v7 = vld [vmem:[%s4524_s9] sm:$0xff]   ;;  %v3705_v9 = vld [vmem:[%s4524_s9 + $0x8] sm:$0xff]  }
 0x12f   : > { %v3169_v13 = vpop.f32.mrb[23].mxu1  ;;  %3449 = vmatprep.subr.bf16.mxu0 %v3704_v7 }
 0x130   : > { %v3170_v14 = vadd.f32 %v3169_v13, %v3168_v12  ;;  %3450 = vmatpush3.bf16.msra.mxu0 %v3704_v7 }
 0x131   : > { %3451 = vmatprep.subr.bf16.mxu0 %v3705_v9 }
 0x132   : > { %v922_v15 = vpop.f32.mrb[20].mxu0 }
 0x133   : > { %v4211_v16 = vadd.f32 %v3167_v11, %v922_v15  ;;  %v924_v17 = vpop.f32.mrb[21].mxu0 }
 0x134   : > { %v925_v18 = vpop.f32.mrb[22].mxu0  ;;  %v3171_v20 = vpop.f32.mrb[24].mxu1  ;;  %3452 = vmatpush3.bf16.msra.mxu0 %v3705_v9 }
 0x135   : > { %v4213_v21 = vadd.f32 %v3170_v14, %v925_v18  ;;  %v927_v22 = vpop.f32.mrb[23].mxu0  ;;  %v3172_v24 = vpop.f32.mrb[25].mxu1  ;;  %v3706_v14 = vld [vmem:[%s4524_s9 + $0x10] sm:$0xff]  }
 0x136   : > { %v3173_v25 = vadd.f32 %v3172_v24, %v3171_v20  ;;  %v3174_v26 = vpop.f32.mrb[26].mxu1  ;;  %3453 = vmatprep.subr.bf16.mxu0 %v3706_v14 }
 0x137   : > { %v3175_v27 = vpop.f32.mrb[27].mxu1 }
 0x138   : > { %v3176_v28 = vadd.f32 %v3175_v27, %v3174_v26  ;;  %v3707_v27 = vld [vmem:[%s4524_s9 + $0x18] sm:$0xff]   ;;  %3454 = vmatpush3.bf16.msra.mxu0 %v3706_v14 }
 0x139   : > { %3455 = vmatprep.subr.bf16.mxu0 %v3707_v27 }
 0x13a   : > { %v930_v29 = vpop.f32.mrb[24].mxu0 }
 0x13b   : > { %v4215_v30 = vadd.f32 %v3173_v25, %v930_v29  ;;  %v932_v31 = vpop.f32.mrb[25].mxu0 }
 0x13c   : > { %v933_v33 = vpop.f32.mrb[26].mxu0  ;;  %v3177_v34 = vpop.f32.mrb[28].mxu1  ;;  %3456 = vmatpush3.bf16.msra.mxu0 %v3707_v27 }
 0x13d   : > { %v4217_v35 = vadd.f32 %v3176_v28, %v933_v33  ;;  %v935_v37 = vpop.f32.mrb[27].mxu0  ;;  %v3178_v38 = vpop.f32.mrb[29].mxu1 }
 0x13e   : > { %v3179_v39 = vadd.f32 %v3178_v38, %v3177_v34  ;;  %v3180_v40 = vpop.f32.mrb[30].mxu1 }
 0x13f   : > { %v3181_v41 = vpop.f32.mrb[31].mxu1 }
 0x140   : > { %v3182_v42 = vadd.f32 %v3181_v41, %v3180_v40 }
 0x142   : > { %v938_v43 = vpop.f32.mrb[28].mxu0 }
 0x143   : > { %v4219_v45 = vadd.f32 %v3179_v39, %v938_v43  ;;  %v940_v46 = vpop.f32.mrb[29].mxu0 }
 0x144   : > { %v941_v47 = vpop.f32.mrb[30].mxu0  ;;  %v3183_v49 = vpop.f32.mrb[32].mxu1 }
 0x145   : > { %v4221_v50 = vadd.f32 %v3182_v42, %v941_v47  ;;  %v943_v51 = vpop.f32.mrb[31].mxu0  ;;  %v3184_v52 = vpop.f32.mrb[33].mxu1 }
 0x146   : > { %v3185_v53 = vadd.f32 %v3184_v52, %v3183_v49  ;;  %v3186_v54 = vpop.f32.mrb[34].mxu1 }
 0x147   : > { %v3187_v55 = vpop.f32.mrb[35].mxu1 }
 0x148   : > { %v3188_v57 = vadd.f32 %v3187_v55, %v3186_v54 }
 0x14a   : > { %v946_v58 = vpop.f32.mrb[32].mxu0 }
 0x14b   : > { %v4223_v59 = vadd.f32 %v3185_v53, %v946_v58  ;;  %v948_v61 = vpop.f32.mrb[33].mxu0 }
 0x14c   : > { %v949_v62 = vpop.f32.mrb[34].mxu0  ;;  %v3189_v63 = vpop.f32.mrb[36].mxu1 }
 0x14d   : > { %v4225_v0 = vadd.f32 %v3188_v57, %v949_v62  ;;  %v951_v1 = vpop.f32.mrb[35].mxu0  ;;  %v3190_v2 = vpop.f32.mrb[37].mxu1 }
 0x14e   : > { %v3191_v3 = vadd.f32 %v3190_v2, %v3189_v63  ;;  %v3192_v5 = vpop.f32.mrb[38].mxu1 }
 0x14f   : > { %v3193_v6 = vpop.f32.mrb[39].mxu1 }
 0x150   : > { %v3194_v10 = vadd.f32 %v3193_v6, %v3192_v5 }
 0x152   : > { %v954_v11 = vpop.f32.mrb[36].mxu0 }
 0x153   : > { %v4233_v12 = vadd.f32 %v3191_v3, %v954_v11  ;;  %v956_v13 = vpop.f32.mrb[37].mxu0 }
 0x154   : > { %v957_v15 = vpop.f32.mrb[38].mxu0  ;;  %v3195_v17 = vpop.f32.mrb[40].mxu1 }
 0x155   : > { %v4238_v18 = vadd.f32 %v3194_v10, %v957_v15  ;;  %v959_v20 = vpop.f32.mrb[39].mxu0  ;;  %v3196_v22 = vpop.f32.mrb[41].mxu1 }
 0x156   : > { %v3197_v24 = vadd.f32 %v3196_v22, %v3195_v17  ;;  %v3198_v25 = vpop.f32.mrb[42].mxu1 }
 0x157   : > { %v3199_v26 = vpop.f32.mrb[43].mxu1 }
 0x158   : > { %v3200_v28 = vadd.f32 %v3199_v26, %v3198_v25 }
 0x15a   : > { %v962_v29 = vpop.f32.mrb[40].mxu0 }
 0x15b   : > { %v4243_v31 = vadd.f32 %v3197_v24, %v962_v29  ;;  %v964_v33 = vpop.f32.mrb[41].mxu0 }
 0x15c   : > { %v965_v34 = vpop.f32.mrb[42].mxu0  ;;  %v3201_v37 = vpop.f32.mrb[44].mxu1 }
 0x15d   : > { %v4245_v38 = vadd.f32 %v3200_v28, %v965_v34  ;;  %v967_v39 = vpop.f32.mrb[43].mxu0  ;;  %v3202_v40 = vpop.f32.mrb[45].mxu1 }
 0x15e   : > { %v3203_v41 = vadd.f32 %v3202_v40, %v3201_v37  ;;  %v3204_v42 = vpop.f32.mrb[46].mxu1 }
 0x15f   : > { %v3205_v43 = vpop.f32.mrb[47].mxu1 }
 0x160   : > { %v3206_v46 = vadd.f32 %v3205_v43, %v3204_v42 }
 0x162   : > { %v970_v47 = vpop.f32.mrb[44].mxu0 }
 0x163   : > { %v4247_v49 = vadd.f32 %v3203_v41, %v970_v47  ;;  %v972_v51 = vpop.f32.mrb[45].mxu0 }
 0x164   : > { %v973_v52 = vpop.f32.mrb[46].mxu0  ;;  %v3207_v53 = vpop.f32.mrb[48].mxu1 }
 0x165   : > { %v4249_v54 = vadd.f32 %v3206_v46, %v973_v52  ;;  %v975_v55 = vpop.f32.mrb[47].mxu0  ;;  %v3208_v57 = vpop.f32.mrb[49].mxu1 }
 0x166   : > { %v3209_v58 = vadd.f32 %v3208_v57, %v3207_v53  ;;  %v3210_v61 = vpop.f32.mrb[50].mxu1 }
 0x167   : > { %v3211_v62 = vpop.f32.mrb[51].mxu1 }
 0x168   : > { %v3212_v63 = vadd.f32 %v3211_v62, %v3210_v61 }
 0x16a   : > { %v978_v1 = vpop.f32.mrb[48].mxu0 }
 0x16b   : > { %v4251_v2 = vadd.f32 %v3209_v58, %v978_v1  ;;  %v980_v3 = vpop.f32.mrb[49].mxu0 }
 0x16c   : > { %v981_v5 = vpop.f32.mrb[50].mxu0  ;;  %v3213_v6 = vpop.f32.mrb[52].mxu1 }
 0x16d   : > { %v4253_v7 = vadd.f32 %v3212_v63, %v981_v5  ;;  %v983_v9 = vpop.f32.mrb[51].mxu0  ;;  %v3214_v10 = vpop.f32.mrb[53].mxu1 }
 0x16e   : > { %v3215_v11 = vadd.f32 %v3214_v10, %v3213_v6  ;;  %v3216_v13 = vpop.f32.mrb[54].mxu1 }
 0x16f   : > { %v3217_v14 = vpop.f32.mrb[55].mxu1 }
 0x170   : > { %v3218_v15 = vadd.f32 %v3217_v14, %v3216_v13 }
 0x172   : > { %v986_v17 = vpop.f32.mrb[52].mxu0 }
 0x173   : > { %v4255_v20 = vadd.f32 %v3215_v11, %v986_v17  ;;  %v988_v22 = vpop.f32.mrb[53].mxu0 }
 0x174   : > { %v989_v24 = vpop.f32.mrb[54].mxu0  ;;  %v3219_v25 = vpop.f32.mrb[56].mxu1  ;;  %v4274_v22 = vld [vmem:[%s4521_s6] ss:$0 sm:$0xff] }
 0x175   : > { %v4257_v26 = vadd.f32 %v3218_v15, %v989_v24  ;;  %v991_v27 = vpop.f32.mrb[55].mxu0  ;;  %v3220_v28 = vpop.f32.mrb[57].mxu1 }
 0x176   : > { %v3221_v29 = vadd.f32 %v3220_v28, %v3219_v25  ;;  %v3222_v33 = vpop.f32.mrb[58].mxu1 }
 0x177   : > { %v3223_v34 = vpop.f32.mrb[59].mxu1 }
 0x178   : > { %v3224_v37 = vadd.f32 %v3223_v34, %v3222_v33 }
 0x17a   : > { %v994_v39 = vpop.f32.mrb[56].mxu0 }
 0x17b   : > { %v4259_v40 = vadd.f32 %v3221_v29, %v994_v39  ;;  %v996_v41 = vpop.f32.mrb[57].mxu0 }
 0x17c   : > { %v997_v42 = vpop.f32.mrb[58].mxu0  ;;  %v3225_v43 = vpop.f32.mrb[60].mxu1 }
 0x17d   : > { %v4261_v46 = vadd.f32 %v3224_v37, %v997_v42  ;;  %v999_v47 = vpop.f32.mrb[59].mxu0  ;;  %v3226_v51 = vpop.f32.mrb[61].mxu1 }
 0x17e   : > { %v3227_v52 = vadd.f32 %v3226_v51, %v3225_v43  ;;  %v3228_v53 = vpop.f32.mrb[62].mxu1 }
 0x17f   : > { %v3229_v55 = vpop.f32.mrb[63].mxu1 }
 0x180   : > { %v3230_v57 = vadd.f32 %v3229_v55, %v3228_v53 }
 0x182   : > { %v1002_v58 = vpop.f32.mrb[60].mxu0 }
 0x183   : > { %v4263_v61 = vadd.f32 %v3227_v52, %v1002_v58  ;;  %v1004_v62 = vpop.f32.mrb[61].mxu0 }
 0x184   : > { %v3327_v63 = vpop.f32.mrb[64].mxu1  ;;  %v1005_v1 = vpop.f32.mrb[62].mxu0 }
 0x185   : > { %v1622_v3 = vadd.f32 %v3327_v63, %v4195_v32  ;;  %v4266_v5 = vadd.f32 %v3230_v57, %v1005_v1  ;;  %v1613_v6 = vpop.f32.mrb[65].mxu1  ;;  %v1007_v9 = vpop.f32.mrb[63].mxu0 }
 0x186   : > { %v1614_v10 = vadd.f32 %v1613_v6, %v4188_v19  ;;  %v3328_v11 = vpop.f32.mrb[66].mxu1 }
 0x187   : > { %v1625_v13 = vadd.f32 %v3328_v11, %v4197_v36  ;;  %v1616_v14 = vpop.f32.mrb[67].mxu1 }
 0x188   : > { %v1617_v15 = vadd.f32 %v1616_v14, %v4190_v23 }
 0x18a   : > { %v3371_v17 = vpop.f32.mrb[64].mxu0 }
 0x18b   : > { %v2112_v24 = vadd.f32 %v3371_v17, %v1622_v3  ;;  %v1983_v32 = vpop.f32.mrb[65].mxu0 }
 0x18c   : > { %v3331_v25 = vpop.f32.mrb[68].mxu1  ;;  %v2110_v27 = vadd.f32 %v1983_v32, %v1614_v10  ;;  %v3372_v28 = vpop.f32.mrb[66].mxu0 }
 0x18d   : > { %v2151_v29 = vadd.f32 %v4274_v22, %v2112_v24  ;;  %v1638_v19 = vadd.f32 %v3331_v25, %v4203_v56  ;;  %v1629_v33 = vpop.f32.mrb[69].mxu1  ;;  %v2113_v36 = vadd.f32 %v3372_v28, %v1625_v13  ;;  %v1986_v34 = vpop.f32.mrb[67].mxu0 }
 0x18e   : > { %v2149_v23 = vadd.f32 %v4274_v22, %v2110_v27  ;;  %v1630_v37 = vadd.f32 %v1629_v33, %v4199_v44  ;;  %v3332_v39 = vpop.f32.mrb[70].mxu1  ;;  %v2111_v41 = vadd.f32 %v1986_v34, %v1617_v15 }
 0x18f   : > { %v2152_v42 = vadd.f32 %v4274_v22, %v2113_v36  ;;  %v1641_v43 = vadd.f32 %v3332_v39, %v4205_v60  ;;  %v1632_v47 = vpop.f32.mrb[71].mxu1  ;;  %v2183_v53 = vmax.f32 %v2151_v29, 0.0 }
 0x190   : > { %v2150_v51 = vadd.f32 %v4274_v22, %v2111_v41  ;;  %v1633_v52 = vadd.f32 %v1632_v47, %v4201_v48  ;;  %v2181_v55 = vmax.f32 %v2149_v23, 0.0 }
 0x191   : > { %v2184_v56 = vmax.f32 %v2152_v42, 0.0 }
 0x192   : > { %v2182_v57 = vmax.f32 %v2150_v51, 0.0  ;;  %v3375_v58 = vpop.f32.mrb[68].mxu0 }
 0x193   : > { %v2214_v62 = vpack.c.bf16 %v2184_v56, %v2183_v53  ;;  %v2116_v63 = vadd.f32 %v3375_v58, %v1638_v19  ;;  %v1999_v1 = vpop.f32.mrb[69].mxu0 }
 0x194   : > { %v3335_v44 = vpop.f32.mrb[72].mxu1  ;;  %v2114_v3 = vadd.f32 %v1999_v1, %v1630_v37  ;;  %v3376_v6 = vpop.f32.mrb[70].mxu0  ;;  %v2213_v9 = vpack.c.bf16 %v2182_v57, %v2181_v55 }
 0x195   : > { %v2155_v10 = vadd.f32 %v4274_v22, %v2116_v63  ;;  %v1654_v60 = vadd.f32 %v3335_v44, %v4211_v16  ;;  %v1645_v11 = vpop.f32.mrb[73].mxu1  ;;  %v2117_v13 = vadd.f32 %v3376_v6, %v1641_v43  ;;  %v2002_v14 = vpop.f32.mrb[71].mxu0 }
 0x196   : > { %v2153_v48 = vadd.f32 %v4274_v22, %v2114_v3  ;;  %v1646_v15 = vadd.f32 %v1645_v11, %v4207_v4  ;;  %v3336_v17 = vpop.f32.mrb[74].mxu1  ;;  %v2115_v24 = vadd.f32 %v2002_v14, %v1633_v52  ;;  %3417 = vmatprep.mubr.bf16.mxu1 %v2213_v9 }
 0x197   : > { %v2156_v32 = vadd.f32 %v4274_v22, %v2117_v13  ;;  %v1657_v25 = vadd.f32 %v3336_v17, %v4213_v21  ;;  %v1648_v27 = vpop.f32.mrb[75].mxu1  ;;  %3418 = vmatmul.mubr.bf16.vlgmr.msra.gmra.mrb[96].mxu1 %v2214_v62  ;;  %v2187_v29 = vmax.f32 %v2155_v10, 0.0 }
 0x198   : > { %v2154_v28 = vadd.f32 %v4274_v22, %v2115_v24  ;;  %v1649_v16 = vadd.f32 %v1648_v27, %v4209_v8  ;;  %v2185_v33 = vmax.f32 %v2153_v48, 0.0 }
 0x199   : > { %v2188_v19 = vmax.f32 %v2156_v32, 0.0 }
 0x19a   : > { %v2186_v36 = vmax.f32 %v2154_v28, 0.0  ;;  %v3379_v34 = vpop.f32.mrb[72].mxu0 }
 0x19b   : > { %v2120_v23 = vadd.f32 %v3379_v34, %v1654_v60  ;;  %v2015_v4 = vpop.f32.mrb[73].mxu0  ;;  %v2216_v37 = vpack.c.bf16 %v2188_v19, %v2187_v29 }
 0x19c   : > { %v3339_v39 = vpop.f32.mrb[76].mxu1  ;;  %v2118_v41 = vadd.f32 %v2015_v4, %v1646_v15  ;;  %v3380_v42 = vpop.f32.mrb[74].mxu0  ;;  %v2215_v43 = vpack.c.bf16 %v2186_v36, %v2185_v33 }
 0x19d   : > { %v2159_v21 = vadd.f32 %v4274_v22, %v2120_v23  ;;  %v1670_v47 = vadd.f32 %v3339_v39, %v4219_v45  ;;  %v1661_v51 = vpop.f32.mrb[77].mxu1  ;;  %v2121_v52 = vadd.f32 %v3380_v42, %v1657_v25  ;;  %v2018_v53 = vpop.f32.mrb[75].mxu0 }
 0x19e   : > { %v2157_v8 = vadd.f32 %v4274_v22, %v2118_v41  ;;  %v1662_v56 = vadd.f32 %v1661_v51, %v4215_v30  ;;  %v3340_v55 = vpop.f32.mrb[78].mxu1  ;;  %v2119_v57 = vadd.f32 %v2018_v53, %v1649_v16  ;;  %3421 = vmatprep.mubr.bf16.mxu1 %v2215_v43 }
 0x19f   : > { %v2160_v58 = vadd.f32 %v4274_v22, %v2121_v52  ;;  %v1673_v62 = vadd.f32 %v3340_v55, %v4221_v50  ;;  %v1664_v63 = vpop.f32.mrb[79].mxu1  ;;  %3422 = vmatmul.mubr.bf16.gmra.mrb[100].mxu1 %v2216_v37  ;;  %v2191_v44 = vmax.f32 %v2159_v21, 0.0 }
 0x1a0   : > { %v2158_v1 = vadd.f32 %v4274_v22, %v2119_v57  ;;  %v1665_v45 = vadd.f32 %v1664_v63, %v4217_v35  ;;  %v2189_v6 = vmax.f32 %v2157_v8, 0.0 }
 0x1a1   : > { %v2192_v3 = vmax.f32 %v2160_v58, 0.0 }
 0x1a2   : > { %v2190_v9 = vmax.f32 %v2158_v1, 0.0  ;;  %v3383_v10 = vpop.f32.mrb[76].mxu0 }
 0x1a3   : > { %v2124_v60 = vadd.f32 %v3383_v10, %v1670_v47  ;;  %v2031_v30 = vpop.f32.mrb[77].mxu0  ;;  %v2218_v11 = vpack.c.bf16 %v2192_v3, %v2191_v44 }
 0x1a4   : > { %v3343_v13 = vpop.f32.mrb[80].mxu1  ;;  %v2122_v14 = vadd.f32 %v2031_v30, %v1662_v56  ;;  %v3384_v48 = vpop.f32.mrb[78].mxu0  ;;  %v2217_v15 = vpack.c.bf16 %v2190_v9, %v2189_v6 }
 0x1a5   : > { %v2163_v50 = vadd.f32 %v4274_v22, %v2124_v60  ;;  %v1686_v17 = vadd.f32 %v3343_v13, %v4233_v12  ;;  %v1677_v24 = vpop.f32.mrb[81].mxu1  ;;  %v2125_v32 = vadd.f32 %v3384_v48, %v1673_v62  ;;  %v2034_v25 = vpop.f32.mrb[79].mxu0 }
 0x1a6   : > { %v2161_v35 = vadd.f32 %v4274_v22, %v2122_v14  ;;  %v1678_v27 = vadd.f32 %v1677_v24, %v4223_v59  ;;  %v3344_v28 = vpop.f32.mrb[82].mxu1  ;;  %v2123_v16 = vadd.f32 %v2034_v25, %v1665_v45  ;;  %3425 = vmatprep.mubr.bf16.mxu1 %v2217_v15 }
 0x1a7   : > { %v2164_v29 = vadd.f32 %v4274_v22, %v2125_v32  ;;  %v1689_v19 = vadd.f32 %v3344_v28, %v4238_v18  ;;  %v1680_v33 = vpop.f32.mrb[83].mxu1  ;;  %3426 = vmatmul.mubr.bf16.gmra.mrb[104].mxu1 %v2218_v11  ;;  %v2195_v34 = vmax.f32 %v2163_v50, 0.0 }
 0x1a8   : > { %v2162_v36 = vadd.f32 %v4274_v22, %v2123_v16  ;;  %v1681_v12 = vadd.f32 %v1680_v33, %v4225_v0  ;;  %v2193_v4 = vmax.f32 %v2161_v35, 0.0 }
 0x1a9   : > { %v2196_v23 = vmax.f32 %v2164_v29, 0.0 }
 0x1aa   : > { %v2194_v37 = vmax.f32 %v2162_v36, 0.0  ;;  %v3387_v39 = vpop.f32.mrb[80].mxu0 }
 0x1ab   : > { %v2128_v41 = vadd.f32 %v3387_v39, %v1686_v17  ;;  %v2047_v59 = vpop.f32.mrb[81].mxu0  ;;  %v2220_v42 = vpack.c.bf16 %v2196_v23, %v2195_v34 }
 0x1ac   : > { %v3347_v43 = vpop.f32.mrb[84].mxu1  ;;  %v2126_v21 = vadd.f32 %v2047_v59, %v1678_v27  ;;  %v3388_v47 = vpop.f32.mrb[82].mxu0  ;;  %v2219_v51 = vpack.c.bf16 %v2194_v37, %v2193_v4 }
 0x1ad   : > { %v2167_v18 = vadd.f32 %v4274_v22, %v2128_v41  ;;  %v1702_v52 = vadd.f32 %v3347_v43, %v4247_v49  ;;  %v1693_v53 = vpop.f32.mrb[85].mxu1  ;;  %v2129_v8 = vadd.f32 %v3388_v47, %v1689_v19  ;;  %v2050_v56 = vpop.f32.mrb[83].mxu0 }
 0x1ae   : > { %v2165_v0 = vadd.f32 %v4274_v22, %v2126_v21  ;;  %v1694_v55 = vadd.f32 %v1693_v53, %v4243_v31  ;;  %v3348_v57 = vpop.f32.mrb[86].mxu1  ;;  %v2127_v58 = vadd.f32 %v2050_v56, %v1681_v12  ;;  %3429 = vmatprep.mubr.bf16.mxu1 %v2219_v51 }
 0x1af   : > { %v2168_v62 = vadd.f32 %v4274_v22, %v2129_v8  ;;  %v1705_v63 = vadd.f32 %v3348_v57, %v4249_v54  ;;  %v1696_v1 = vpop.f32.mrb[87].mxu1  ;;  %3430 = vmatmul.mubr.bf16.gmra.mrb[108].mxu1 %v2220_v42  ;;  %v2199_v44 = vmax.f32 %v2167_v18, 0.0 }
 0x1b0   : > { %v2166_v45 = vadd.f32 %v4274_v22, %v2127_v58  ;;  %v1697_v49 = vadd.f32 %v1696_v1, %v4245_v38  ;;  %v2197_v6 = vmax.f32 %v2165_v0, 0.0 }
 0x1b1   : > { %v2200_v3 = vmax.f32 %v2168_v62, 0.0 }
 0x1b2   : > { %v2198_v9 = vmax.f32 %v2166_v45, 0.0  ;;  %v3391_v10 = vpop.f32.mrb[84].mxu0 }
 0x1b3   : > { %v2132_v60 = vadd.f32 %v3391_v10, %v1702_v52  ;;  %v2063_v31 = vpop.f32.mrb[85].mxu0  ;;  %v2222_v30 = vpack.c.bf16 %v2200_v3, %v2199_v44 }
 0x1b4   : > { %v3351_v11 = vpop.f32.mrb[88].mxu1  ;;  %v2130_v13 = vadd.f32 %v2063_v31, %v1694_v55  ;;  %v3392_v14 = vpop.f32.mrb[86].mxu0  ;;  %v2221_v48 = vpack.c.bf16 %v2198_v9, %v2197_v6 }
 0x1b5   : > { %v2171_v54 = vadd.f32 %v4274_v22, %v2132_v60  ;;  %v1718_v15 = vadd.f32 %v3351_v11, %v4255_v20  ;;  %v1709_v50 = vpop.f32.mrb[89].mxu1  ;;  %v2133_v17 = vadd.f32 %v3392_v14, %v1705_v63  ;;  %v2066_v24 = vpop.f32.mrb[87].mxu0 }
 0x1b6   : > { %v2169_v38 = vadd.f32 %v4274_v22, %v2130_v13  ;;  %v1710_v32 = vadd.f32 %v1709_v50, %v4251_v2  ;;  %v3352_v25 = vpop.f32.mrb[90].mxu1  ;;  %v2131_v35 = vadd.f32 %v2066_v24, %v1697_v49  ;;  %3433 = vmatprep.mubr.bf16.mxu1 %v2221_v48 }
 0x1b7   : > { %v2172_v27 = vadd.f32 %v4274_v22, %v2133_v17  ;;  %v1721_v28 = vadd.f32 %v3352_v25, %v4257_v26  ;;  %v1712_v16 = vpop.f32.mrb[91].mxu1  ;;  %3434 = vmatmul.mubr.bf16.gmra.mrb[112].mxu1 %v2222_v30  ;;  %v2203_v19 = vmax.f32 %v2171_v54, 0.0 }
 0x1b8   : > { %v2170_v29 = vadd.f32 %v4274_v22, %v2131_v35  ;;  %v1713_v20 = vadd.f32 %v1712_v16, %v4253_v7  ;;  %v2201_v36 = vmax.f32 %v2169_v38, 0.0 }
 0x1b9   : > { %v2204_v33 = vmax.f32 %v2172_v27, 0.0 }
 0x1ba   : > { %v2202_v12 = vmax.f32 %v2170_v29, 0.0  ;;  %v3395_v34 = vpop.f32.mrb[88].mxu0 }
 0x1bb   : > { %v2136_v23 = vadd.f32 %v3395_v34, %v1718_v15  ;;  %v2079_v2 = vpop.f32.mrb[89].mxu0  ;;  %v2224_v4 = vpack.c.bf16 %v2204_v33, %v2203_v19  ;;  %v4339_v15 = vld [vmem:[%s4523_s8] ss:$0 sm:$0xff] }
 0x1bc   : > { %v3355_v37 = vpop.f32.mrb[92].mxu1  ;;  %v2134_v39 = vadd.f32 %v2079_v2, %v1710_v32  ;;  %v3396_v41 = vpop.f32.mrb[90].mxu0  ;;  %v2223_v59 = vpack.c.bf16 %v2202_v12, %v2201_v36 }
 0x1bd   : > { %v2175_v26 = vadd.f32 %v4274_v22, %v2136_v23  ;;  %v1734_v42 = vadd.f32 %v3355_v37, %v4263_v61  ;;  %v1725_v43 = vpop.f32.mrb[93].mxu1  ;;  %v2137_v21 = vadd.f32 %v3396_v41, %v1721_v28  ;;  %v2082_v47 = vpop.f32.mrb[91].mxu0 }
 0x1be   : > { %v2173_v7 = vadd.f32 %v4274_v22, %v2134_v39  ;;  %v1726_v51 = vadd.f32 %v1725_v43, %v4259_v40  ;;  %v3356_v18 = vpop.f32.mrb[94].mxu1  ;;  %v2135_v52 = vadd.f32 %v2082_v47, %v1713_v20  ;;  %3437 = vmatprep.mubr.bf16.mxu1 %v2223_v59 }
 0x1bf   : > { %v2176_v53 = vadd.f32 %v4274_v22, %v2137_v21  ;;  %v1737_v8 = vadd.f32 %v3356_v18, %v4266_v5  ;;  %v1728_v56 = vpop.f32.mrb[95].mxu1  ;;  %3438 = vmatmul.mubr.bf16.gmra.mrb[116].mxu1 %v2224_v4  ;;  %v2207_v55 = vmax.f32 %v2175_v26, 0.0 }
 0x1c0   : > { %v2174_v0 = vadd.f32 %v4274_v22, %v2135_v52  ;;  %v1729_v61 = vadd.f32 %v1728_v56, %v4261_v46  ;;  %v2205_v58 = vmax.f32 %v2173_v7, 0.0 }
 0x1c1   : > { %v2208_v57 = vmax.f32 %v2176_v53, 0.0 }
 0x1c2   : > { %v2206_v62 = vmax.f32 %v2174_v0, 0.0  ;;  %v3399_v63 = vpop.f32.mrb[92].mxu0 }
 0x1c3   : > { %v2140_v1 = vadd.f32 %v3399_v63, %v1734_v42  ;;  %v2095_v40 = vpop.f32.mrb[93].mxu0  ;;  %v2226_v45 = vpack.c.bf16 %v2208_v57, %v2207_v55 }
 0x1c4   : > { %v2138_v49 = vadd.f32 %v2095_v40, %v1726_v51  ;;  %v3400_v44 = vpop.f32.mrb[94].mxu0  ;;  %v2225_v3 = vpack.c.bf16 %v2206_v62, %v2205_v58 }
 0x1c5   : > { %v2179_v6 = vadd.f32 %v4274_v22, %v2140_v1  ;;  %v2141_v5 = vadd.f32 %v3400_v44, %v1737_v8  ;;  %v2098_v9 = vpop.f32.mrb[95].mxu0 }
 0x1c6   : > { %v2177_v10 = vadd.f32 %v4274_v22, %v2138_v49  ;;  %v2139_v60 = vadd.f32 %v2098_v9, %v1729_v61  ;;  %3441 = vmatprep.mubr.bf16.mxu1 %v2225_v3 }
 0x1c7   : > { %v2180_v46 = vadd.f32 %v4274_v22, %v2141_v5  ;;  %3442 = vmatmul.mubr.bf16.gmra.mrb[120].mxu1 %v2226_v45  ;;  %v2211_v30 = vmax.f32 %v2179_v6, 0.0 }
 0x1c8   : > { %v2178_v31 = vadd.f32 %v4274_v22, %v2139_v60  ;;  %v2209_v13 = vmax.f32 %v2177_v10, 0.0 }
 0x1c9   : > { %v2212_v11 = vmax.f32 %v2180_v46, 0.0 }
 0x1ca   : > { %v2210_v14 = vmax.f32 %v2178_v31, 0.0 }
 0x1cb   : > { %v2228_v48 = vpack.c.bf16 %v2212_v11, %v2211_v30 }
 0x1cc   : > { %v2227_v54 = vpack.c.bf16 %v2210_v14, %v2209_v13 }
 0x1ce   : > { %3445 = vmatprep.mubr.bf16.mxu1 %v2227_v54 }
 0x1cf   : > { %3446 = vmatmul.mubr.bf16.gmra.mrb[124].mxu1 %v2228_v48 }
 0x26a   : > { %v3419_v50 = vpop.f32.mrb[96].mxu1 }
 0x26b   : > { %v2343_v17 = vadd.f32 %v3419_v50, %v4339_v15  ;;  %v2334_v24 = vpop.f32.mrb[97].mxu1 }
 0x26c   : > { %v2335_v38 = vadd.f32 %v4339_v15, %v2334_v24  ;;  %v3420_v22 = vpop.f32.mrb[98].mxu1 }
 0x26d   : > { %v2346_v32 = vadd.f32 %v3420_v22, %v4339_v15  ;;  %v2337_v25 = vpop.f32.mrb[99].mxu1  ;;  %v2463_v27 = vmax.f32 %v2343_v17, 0.0 }
 0x26e   : > { %v2338_v35 = vadd.f32 %v4339_v15, %v2337_v25  ;;  %v2461_v16 = vmax.f32 %v2335_v38, 0.0 }
 0x26f   : > { %v2464_v28 = vmax.f32 %v2346_v32, 0.0 }
 0x270   : > { %v2462_v29 = vmax.f32 %v2338_v35, 0.0 }
 0x271   : > { %v2494_v20 = vpack.c.bf16 %v2464_v28, %v2463_v27 }
 0x272   : > { %v2493_v19 = vpack.c.bf16 %v2462_v29, %v2461_v16  ;;  %v3423_v33 = vpop.f32.mrb[100].mxu1 }
 0x273   : > { %v2359_v36 = vadd.f32 %v3423_v33, %v4339_v15  ;;  %v2350_v12 = vpop.f32.mrb[101].mxu1 }
 0x274   : > { %v2351_v34 = vadd.f32 %v4339_v15, %v2350_v12  ;;  %v3424_v23 = vpop.f32.mrb[102].mxu1  ;;  %3457 = vmatprep.mubr.msk.bf16.mxu0 %vm1369_vm1, %v2493_v19 }
 0x275   : > { %v2362_v2 = vadd.f32 %v3424_v23, %v4339_v15  ;;  %v2353_v4 = vpop.f32.mrb[103].mxu1  ;;  %3458 = vmatmul.mubr.msk.bf16.vlgmr.msra.gmra.mrb[96].mxu0 %vm1369_vm1, %v2494_v20  ;;  %v2467_v39 = vmax.f32 %v2359_v36, 0.0 }
 0x276   : > { %v2354_v37 = vadd.f32 %v4339_v15, %v2353_v4  ;;  %v2465_v59 = vmax.f32 %v2351_v34, 0.0 }
 0x277   : > { %v2468_v41 = vmax.f32 %v2362_v2, 0.0 }
 0x278   : > { %v2466_v26 = vmax.f32 %v2354_v37, 0.0 }
 0x279   : > { %v2496_v42 = vpack.c.bf16 %v2468_v41, %v2467_v39 }
 0x27a   : > { %v2495_v43 = vpack.c.bf16 %v2466_v26, %v2465_v59  ;;  %v3427_v21 = vpop.f32.mrb[104].mxu1 }
 0x27b   : > { %v2375_v47 = vadd.f32 %v3427_v21, %v4339_v15  ;;  %v2366_v7 = vpop.f32.mrb[105].mxu1 }
 0x27c   : > { %v2367_v51 = vadd.f32 %v4339_v15, %v2366_v7  ;;  %v3428_v18 = vpop.f32.mrb[106].mxu1  ;;  %3461 = vmatprep.mubr.msk.bf16.mxu0 %vm1369_vm1, %v2495_v43 }
 0x27d   : > { %v2378_v52 = vadd.f32 %v3428_v18, %v4339_v15  ;;  %v2369_v53 = vpop.f32.mrb[107].mxu1  ;;  %3462 = vmatmul.mubr.msk.bf16.gmra.mrb[100].mxu0 %vm1369_vm1, %v2496_v42  ;;  %v2471_v56 = vmax.f32 %v2375_v47, 0.0 }
 0x27e   : > { %v2370_v8 = vadd.f32 %v4339_v15, %v2369_v53  ;;  %v2469_v61 = vmax.f32 %v2367_v51, 0.0 }
 0x27f   : > { %v2472_v0 = vmax.f32 %v2378_v52, 0.0 }
 0x280   : > { %v2470_v55 = vmax.f32 %v2370_v8, 0.0 }
 0x281   : > { %v2498_v57 = vpack.c.bf16 %v2472_v0, %v2471_v56 }
 0x282   : > { %v2497_v58 = vpack.c.bf16 %v2470_v55, %v2469_v61  ;;  %v3431_v62 = vpop.f32.mrb[108].mxu1 }
 0x283   : > { %v2391_v63 = vadd.f32 %v3431_v62, %v4339_v15  ;;  %v2382_v1 = vpop.f32.mrb[109].mxu1 }
 0x284   : > { %v2383_v40 = vadd.f32 %v4339_v15, %v2382_v1  ;;  %v3432_v45 = vpop.f32.mrb[110].mxu1  ;;  %3465 = vmatprep.mubr.msk.bf16.mxu0 %vm1369_vm1, %v2497_v58 }
 0x285   : > { %v2394_v49 = vadd.f32 %v3432_v45, %v4339_v15  ;;  %v2385_v44 = vpop.f32.mrb[111].mxu1  ;;  %3466 = vmatmul.mubr.msk.bf16.gmra.mrb[104].mxu0 %vm1369_vm1, %v2498_v57  ;;  %v2475_v6 = vmax.f32 %v2391_v63, 0.0 }
 0x286   : > { %v2386_v3 = vadd.f32 %v4339_v15, %v2385_v44  ;;  %v2473_v9 = vmax.f32 %v2383_v40, 0.0 }
 0x287   : > { %v2476_v5 = vmax.f32 %v2394_v49, 0.0 }
 0x288   : > { %v2474_v10 = vmax.f32 %v2386_v3, 0.0  ;;  %v4395_v3 = vld [vmem:[%s4525_s10] ss:$0 sm:$0xff] }
 0x289   : > { %v2500_v60 = vpack.c.bf16 %v2476_v5, %v2475_v6 }
 0x28a   : > { %v2499_v46 = vpack.c.bf16 %v2474_v10, %v2473_v9  ;;  %v3435_v31 = vpop.f32.mrb[112].mxu1 }
 0x28b   : > { %v2407_v30 = vadd.f32 %v3435_v31, %v4339_v15  ;;  %v2398_v11 = vpop.f32.mrb[113].mxu1 }
 0x28c   : > { %v2399_v13 = vadd.f32 %v4339_v15, %v2398_v11  ;;  %v3436_v14 = vpop.f32.mrb[114].mxu1  ;;  %3469 = vmatprep.mubr.msk.bf16.mxu0 %vm1369_vm1, %v2499_v46 }
 0x28d   : > { %v2410_v48 = vadd.f32 %v3436_v14, %v4339_v15  ;;  %v2401_v54 = vpop.f32.mrb[115].mxu1  ;;  %3470 = vmatmul.mubr.msk.bf16.gmra.mrb[108].mxu0 %vm1369_vm1, %v2500_v60  ;;  %v2479_v17 = vmax.f32 %v2407_v30, 0.0 }
 0x28e   : > { %v2402_v50 = vadd.f32 %v4339_v15, %v2401_v54  ;;  %v2477_v38 = vmax.f32 %v2399_v13, 0.0 }
 0x28f   : > { %v2480_v24 = vmax.f32 %v2410_v48, 0.0 }
 0x290   : > { %v2478_v22 = vmax.f32 %v2402_v50, 0.0 }
 0x291   : > { %v2502_v32 = vpack.c.bf16 %v2480_v24, %v2479_v17 }
 0x292   : > { %v2501_v25 = vpack.c.bf16 %v2478_v22, %v2477_v38  ;;  %v3439_v35 = vpop.f32.mrb[116].mxu1 }
 0x293   : > { %v2423_v27 = vadd.f32 %v3439_v35, %v4339_v15  ;;  %v2414_v28 = vpop.f32.mrb[117].mxu1 }
 0x294   : > { %v2415_v16 = vadd.f32 %v4339_v15, %v2414_v28  ;;  %v3440_v29 = vpop.f32.mrb[118].mxu1  ;;  %3473 = vmatprep.mubr.msk.bf16.mxu0 %vm1369_vm1, %v2501_v25 }
 0x295   : > { %v2426_v20 = vadd.f32 %v3440_v29, %v4339_v15  ;;  %v2417_v19 = vpop.f32.mrb[119].mxu1  ;;  %3474 = vmatmul.mubr.msk.bf16.gmra.mrb[112].mxu0 %vm1369_vm1, %v2502_v32  ;;  %v2483_v36 = vmax.f32 %v2423_v27, 0.0 }
 0x296   : > { %v2418_v33 = vadd.f32 %v4339_v15, %v2417_v19  ;;  %v2481_v34 = vmax.f32 %v2415_v16, 0.0 }
 0x297   : > { %v2484_v12 = vmax.f32 %v2426_v20, 0.0 }
 0x298   : > { %v2482_v23 = vmax.f32 %v2418_v33, 0.0 }
 0x299   : > { %v2504_v2 = vpack.c.bf16 %v2484_v12, %v2483_v36 }
 0x29a   : > { %v2503_v4 = vpack.c.bf16 %v2482_v23, %v2481_v34  ;;  %v3443_v37 = vpop.f32.mrb[120].mxu1 }
 0x29b   : > { %v2439_v39 = vadd.f32 %v3443_v37, %v4339_v15  ;;  %v2430_v41 = vpop.f32.mrb[121].mxu1 }
 0x29c   : > { %v2431_v59 = vadd.f32 %v4339_v15, %v2430_v41  ;;  %v3444_v26 = vpop.f32.mrb[122].mxu1  ;;  %3477 = vmatprep.mubr.msk.bf16.mxu0 %vm1369_vm1, %v2503_v4 }
 0x29d   : > { %v2442_v42 = vadd.f32 %v3444_v26, %v4339_v15  ;;  %v2433_v43 = vpop.f32.mrb[123].mxu1  ;;  %3478 = vmatmul.mubr.msk.bf16.gmra.mrb[116].mxu0 %vm1369_vm1, %v2504_v2  ;;  %v2487_v47 = vmax.f32 %v2439_v39, 0.0 }
 0x29e   : > { %v2434_v21 = vadd.f32 %v4339_v15, %v2433_v43  ;;  %v2485_v51 = vmax.f32 %v2431_v59, 0.0 }
 0x29f   : > { %v2488_v7 = vmax.f32 %v2442_v42, 0.0 }
 0x2a0   : > { %v2486_v18 = vmax.f32 %v2434_v21, 0.0 }
 0x2a1   : > { %v2506_v52 = vpack.c.bf16 %v2488_v7, %v2487_v47 }
 0x2a2   : > { %v2505_v53 = vpack.c.bf16 %v2486_v18, %v2485_v51  ;;  %v3447_v8 = vpop.f32.mrb[124].mxu1 }
 0x2a3   : > { %v2455_v56 = vadd.f32 %v3447_v8, %v4339_v15  ;;  %v2446_v0 = vpop.f32.mrb[125].mxu1 }
 0x2a4   : > { %v2447_v61 = vadd.f32 %v4339_v15, %v2446_v0  ;;  %v3448_v55 = vpop.f32.mrb[126].mxu1  ;;  %3481 = vmatprep.mubr.msk.bf16.mxu0 %vm1369_vm1, %v2505_v53 }
 0x2a5   : > { %v2458_v57 = vadd.f32 %v3448_v55, %v4339_v15  ;;  %v2449_v58 = vpop.f32.mrb[127].mxu1  ;;  %3482 = vmatmul.mubr.msk.bf16.gmra.mrb[120].mxu0 %vm1369_vm1, %v2506_v52  ;;  %v2491_v63 = vmax.f32 %v2455_v56, 0.0 }
 0x2a6   : > { %v2450_v62 = vadd.f32 %v4339_v15, %v2449_v58  ;;  %v2489_v40 = vmax.f32 %v2447_v61, 0.0 }
 0x2a7   : > { %v2492_v1 = vmax.f32 %v2458_v57, 0.0 }
 0x2a8   : > { %v2490_v45 = vmax.f32 %v2450_v62, 0.0 }
 0x2a9   : > { %v2508_v49 = vpack.c.bf16 %v2492_v1, %v2491_v63 }
 0x2aa   : > { %v2507_v44 = vpack.c.bf16 %v2490_v45, %v2489_v40 }
 0x2ac   : > { %3485 = vmatprep.mubr.msk.bf16.mxu0 %vm1369_vm1, %v2507_v44 }
 0x2ad   : > { %3486 = vmatmul.mubr.msk.bf16.gmra.mrb[124].mxu0 %vm1369_vm1, %v2508_v49 }
 0x348   : > { %v3459_v6 = vpop.f32.mrb[96].mxu0 }
 0x349   : > { %v2639_v15 = vadd.f32 %v3459_v6, %v4395_v3  ;;  %v2630_v5 = vpop.f32.mrb[97].mxu0 }
 0x34a   : > { %v2631_v9 = vadd.f32 %v4395_v3, %v2630_v5  ;;  %v3460_v10 = vpop.f32.mrb[98].mxu0 }
 0x34b   : > { %2759 = vst [vmem:[%s4399_s26 + $0x10] sm:$0xff] %v2639_v15  ;;  %v2642_v60 = vadd.f32 %v3460_v10, %v4395_v3  ;;  %v2633_v46 = vpop.f32.mrb[99].mxu0 }
 0x34c   : > { %2757 = vst [vmem:[%s4399_s26] sm:$0xff] %v2631_v9  ;;  %v2634_v31 = vadd.f32 %v4395_v3, %v2633_v46 }
 0x34d   : > { %2760 = vst [vmem:[%s4399_s26 + $0x18] sm:$0xff] %v2642_v60 }
 0x34e   : > { %2758 = vst [vmem:[%s4399_s26 + $0x8] sm:$0xff] %v2634_v31 }
 0x350   : > { %v3463_v30 = vpop.f32.mrb[100].mxu0 }
 0x351   : > { %v2655_v11 = vadd.f32 %v3463_v30, %v4395_v3  ;;  %v2646_v13 = vpop.f32.mrb[101].mxu0 }
 0x352   : > { %v2647_v14 = vadd.f32 %v4395_v3, %v2646_v13  ;;  %v3464_v48 = vpop.f32.mrb[102].mxu0 }
 0x353   : > { %2763 = vst [vmem:[%s4399_s26 + $0x30] sm:$0xff] %v2655_v11  ;;  %v2658_v54 = vadd.f32 %v3464_v48, %v4395_v3  ;;  %v2649_v50 = vpop.f32.mrb[103].mxu0 }
 0x354   : > { %2761 = vst [vmem:[%s4399_s26 + $0x20] sm:$0xff] %v2647_v14  ;;  %v2650_v17 = vadd.f32 %v4395_v3, %v2649_v50 }
 0x355   : > { %2764 = vst [vmem:[%s4399_s26 + $0x38] sm:$0xff] %v2658_v54 }
 0x356   : > { %2762 = vst [vmem:[%s4399_s26 + $0x28] sm:$0xff] %v2650_v17 }
 0x358   : > { %v3467_v24 = vpop.f32.mrb[104].mxu0 }
 0x359   : > { %v2671_v38 = vadd.f32 %v3467_v24, %v4395_v3  ;;  %v2662_v22 = vpop.f32.mrb[105].mxu0 }
 0x35a   : > { %v2663_v32 = vadd.f32 %v4395_v3, %v2662_v22  ;;  %v3468_v25 = vpop.f32.mrb[106].mxu0 }
 0x35b   : > { %2767 = vst [vmem:[%s4399_s26 + $0x50] sm:$0xff] %v2671_v38  ;;  %v2674_v35 = vadd.f32 %v3468_v25, %v4395_v3  ;;  %v2665_v27 = vpop.f32.mrb[107].mxu0 }
 0x35c   : > { %2765 = vst [vmem:[%s4399_s26 + $0x40] sm:$0xff] %v2663_v32  ;;  %v2666_v28 = vadd.f32 %v4395_v3, %v2665_v27 }
 0x35d   : > { %2768 = vst [vmem:[%s4399_s26 + $0x58] sm:$0xff] %v2674_v35 }
 0x35e   : > { %2766 = vst [vmem:[%s4399_s26 + $0x48] sm:$0xff] %v2666_v28 }
 0x360   : > { %v3471_v16 = vpop.f32.mrb[108].mxu0 }
 0x361   : > { %v2687_v29 = vadd.f32 %v3471_v16, %v4395_v3  ;;  %v2678_v20 = vpop.f32.mrb[109].mxu0 }
 0x362   : > { %v2679_v19 = vadd.f32 %v4395_v3, %v2678_v20  ;;  %v3472_v33 = vpop.f32.mrb[110].mxu0 }
 0x363   : > { %2771 = vst [vmem:[%s4399_s26 + $0x70] sm:$0xff] %v2687_v29  ;;  %v2690_v36 = vadd.f32 %v3472_v33, %v4395_v3  ;;  %v2681_v12 = vpop.f32.mrb[111].mxu0 }
 0x364   : > { %2769 = vst [vmem:[%s4399_s26 + $0x60] sm:$0xff] %v2679_v19  ;;  %v2682_v34 = vadd.f32 %v4395_v3, %v2681_v12 }
 0x365   : > { %2772 = vst [vmem:[%s4399_s26 + $0x78] sm:$0xff] %v2690_v36 }
 0x366   : > { %2770 = vst [vmem:[%s4399_s26 + $0x68] sm:$0xff] %v2682_v34 }
 0x368   : > { %v3475_v23 = vpop.f32.mrb[112].mxu0 }
 0x369   : > { %v2703_v2 = vadd.f32 %v3475_v23, %v4395_v3  ;;  %v2694_v4 = vpop.f32.mrb[113].mxu0 }
 0x36a   : > { %v2695_v37 = vadd.f32 %v4395_v3, %v2694_v4  ;;  %v3476_v39 = vpop.f32.mrb[114].mxu0 }
 0x36b   : > { %2775 = vst [vmem:[%s4399_s26 + $0x90] sm:$0xff] %v2703_v2  ;;  %v2706_v41 = vadd.f32 %v3476_v39, %v4395_v3  ;;  %v2697_v59 = vpop.f32.mrb[115].mxu0 }
 0x36c   : > { %2773 = vst [vmem:[%s4399_s26 + $0x80] sm:$0xff] %v2695_v37  ;;  %v2698_v26 = vadd.f32 %v4395_v3, %v2697_v59 }
 0x36d   : > { %2776 = vst [vmem:[%s4399_s26 + $0x98] sm:$0xff] %v2706_v41 }
 0x36e   : > { %2774 = vst [vmem:[%s4399_s26 + $0x88] sm:$0xff] %v2698_v26 }
 0x370   : > { %v3479_v42 = vpop.f32.mrb[116].mxu0 }
 0x371   : > { %v2719_v43 = vadd.f32 %v3479_v42, %v4395_v3  ;;  %v2710_v21 = vpop.f32.mrb[117].mxu0 }
 0x372   : > { %v2711_v47 = vadd.f32 %v4395_v3, %v2710_v21  ;;  %v3480_v7 = vpop.f32.mrb[118].mxu0 }
 0x373   : > { %2779 = vst [vmem:[%s4399_s26 + $0xb0] sm:$0xff] %v2719_v43  ;;  %v2722_v51 = vadd.f32 %v3480_v7, %v4395_v3  ;;  %v2713_v18 = vpop.f32.mrb[119].mxu0 }
 0x374   : > { %2777 = vst [vmem:[%s4399_s26 + $0xa0] sm:$0xff] %v2711_v47  ;;  %v2714_v52 = vadd.f32 %v4395_v3, %v2713_v18 }
 0x375   : > { %2780 = vst [vmem:[%s4399_s26 + $0xb8] sm:$0xff] %v2722_v51 }
 0x376   : > { %2778 = vst [vmem:[%s4399_s26 + $0xa8] sm:$0xff] %v2714_v52 }
 0x378   : > { %v3483_v53 = vpop.f32.mrb[120].mxu0 }
 0x379   : > { %v2735_v8 = vadd.f32 %v3483_v53, %v4395_v3  ;;  %v2726_v56 = vpop.f32.mrb[121].mxu0 }
 0x37a   : > { %v2727_v0 = vadd.f32 %v4395_v3, %v2726_v56  ;;  %v3484_v61 = vpop.f32.mrb[122].mxu0 }
 0x37b   : > { %2783 = vst [vmem:[%s4399_s26 + $0xd0] sm:$0xff] %v2735_v8  ;;  %v2738_v55 = vadd.f32 %v3484_v61, %v4395_v3  ;;  %v2729_v57 = vpop.f32.mrb[123].mxu0 }
 0x37c   : > { %2781 = vst [vmem:[%s4399_s26 + $0xc0] sm:$0xff] %v2727_v0  ;;  %v2730_v58 = vadd.f32 %v4395_v3, %v2729_v57 }
 0x37d   : > { %2784 = vst [vmem:[%s4399_s26 + $0xd8] sm:$0xff] %v2738_v55 }
 0x37e   : > { %2782 = vst [vmem:[%s4399_s26 + $0xc8] sm:$0xff] %v2730_v58 }
 0x380   : > { %v3487_v62 = vpop.f32.mrb[124].mxu0 }
 0x381   : > { %v2751_v63 = vadd.f32 %v3487_v62, %v4395_v3  ;;  %v2742_v1 = vpop.f32.mrb[125].mxu0 }
 0x382   : > { %v2743_v40 = vadd.f32 %v4395_v3, %v2742_v1  ;;  %v3488_v45 = vpop.f32.mrb[126].mxu0 }
 0x383   : > { %2787 = vst [vmem:[%s4399_s26 + $0xf0] sm:$0xff] %v2751_v63  ;;  %v2754_v49 = vadd.f32 %v3488_v45, %v4395_v3  ;;  %v2745_v44 = vpop.f32.mrb[127].mxu0 }
 0x384   : > { %2785 = vst [vmem:[%s4399_s26 + $0xe0] sm:$0xff] %v2743_v40  ;;  %v2746_v6 = vadd.f32 %v4395_v3, %v2745_v44 }
 0x385   : > { %2788 = vst [vmem:[%s4399_s26 + $0xf8] sm:$0xff] %v2754_v49 }
 0x386   : > { %2786 = vst [vmem:[%s4399_s26 + $0xe8] sm:$0xff] %v2746_v6 }
 0x387   : > { %3721 = shalt.err (!%p3718_p3)
}
 0x388   : > { %s3722_s12 = scalar_lea.hbm %s4464_s15, 4096  ;;  %s3726_s24 = scalar_lea.hbm %s4526_s11, 8192 }
 0x389   : > { %p3723_p4 = scmp.ne.s32.totalorder %s4464_s15, %s3722_s12  ;;  %p3727_p9 = scmp.lt.u32.totalorder %s4464_s15, %s4526_s11 }
 0x38a   : > { %p3728_p10 = scmp.lt.u32.totalorder %s3726_s24, %s3722_s12  ;;  %p3730_p12 = scmp.lt.u32.totalorder %s3722_s12, %s4464_s15 }
 0x38b   : > { %p3724_p7 = pnand %p3723_p4, %p3874_p5 }
 0x38c   : > { %p3729_p11 = por %p3728_p10, %p3727_p9 }
 0x38d   : > { %p3725_p8 = pneg %p3724_p7 }
 0x38e   : > { %p3731_p13 = por %p3730_p12, %p3729_p11 }
 0x390   : > { %p3732_p0 = pnand %p3731_p13, %p3725_p8 }
 0x392   : > { %3735 = shalt.err (!%p3732_p0)
}
 0x393   : > { %s3774_s30 = smov 128   ;;  %s3775_s19 = smov 8  }
 0x394   : > { %3490 = dma.vmem_to_hbm [thread:$0]  (%p3874_p5), %s4466_s25, 4096, %s4464_s15, %s4474_s21, %s3774_s30, %s3774_s30, %s3775_s19  }
 0x395 PF: > { %p3496_p1 = scmp.ge.s32.totalorder %s3770_s20, 2  ;;  %s2818_s22 = sand.u32 1, %s3758_s17  }
 0x396   : > { %s2819_s13 = scalar_lea.sflag [#allocation3], %s2818_s22 }
 0x397   : > { %p3493_p2 = pnand %p3496_p1, %p3878_p6 }
 0x399   : > { %3753 = dma.done.wait (!%p3493_p2), %s2819_s13, 4096  }
 0x39a   : > { %3755 = vsyncadd (!%p3493_p2), %s2819_s13, 4294963200  ;;  %s4532_s12 = sld [smem:[#allocation5_spill]]  ;;  %s4533_s19 = sld [smem:[#allocation6_spill]] }
 0x39b   : > { %p21_p3 = scmp.ge.s32.totalorder %s3861_s23, 4   ;;  %s4534_s17 = smov %s3762_s18 }
 0x39c   : > { %s4536_s20 = smov %s3861_s23 }
 0x39d   :  { %23 = sbr.rel (!%p21_p3) target bundleno = 3 (0x3), region = 105 }
 0x3a0   : > { %s4535_s18 = smov %s4532_s12 }
 0x3a4   :  { %2824 = vsyncpa [#allocation3], 1 }
 0x3a5   :  { %2826 = vsyncpa [#allocation3 + $0x1], 1 }

</bundles_post_ra>
